<compile_context>
chip_gen: v6e
topology: v6e:2x2x1
jax: 0.10.0
libtpu: 0.0.40
codegen_flags: <defaults>
</compile_context>

<pallas_src>
import math
import functools
import jax
import jax.numpy as jnp
from jax import lax
from jax.experimental import pallas as pl
from jax.experimental.pallas import tpu as pltpu

LEAKY_SLOPE = 0.01     # nn.LeakyReLU() default
LN_EPS = 1e-5          # nn.LayerNorm default
NEG_INF = -1e30        # finite stand-in for -inf in the causal mask (exp underflows to 0)


def _leaky_relu(x):
    return jnp.where(x >= 0, x, LEAKY_SLOPE * x)


def _layer_norm(x, g, b):
    mu = jnp.mean(x, axis=-1, keepdims=True)
    xc = x - mu
    var = jnp.mean(xc * xc, axis=-1, keepdims=True)
    return xc * lax.rsqrt(var + LN_EPS) * g + b


def nn_d_kernel(x_ref, pe_ref,
                emb_w_ref, emb_b_ref,
                wqkv_ref, bqkv_ref, wo_ref, wob_ref,
                n1g_ref, n1b_ref,
                ff1w_ref, ff1b_ref, ff2w_ref, ff2b_ref,
                n2g_ref, n2b_ref,
                h1w_ref, h1b_ref, h2w_ref, h2b_ref, h3w_ref, h3b_ref,
                o_ref, h_scr, *, heads):
    bt, L, _ = x_ref.shape
    dim = pe_ref.shape[1]
    hd = dim // heads
    M = bt * L
    l_idx = pl.program_id(1)

    # ---- first layer step only: embedding + positional encoding into persistent scratch
    @pl.when(l_idx == 0)
    def _():
        x = x_ref[...].reshape(M, 6)
        e = jnp.dot(x, emb_w_ref[...], preferred_element_type=jnp.float32) + emb_b_ref[...]
        e = _leaky_relu(e)
        e = e.reshape(bt, L, dim) + pe_ref[...][None, :, :]
        h_scr[...] = e.reshape(M, dim)

    # causal (square subsequent) additive mask, built in-registers (no HBM traffic)
    row = lax.broadcasted_iota(jnp.int32, (L, L), 0)
    col = lax.broadcasted_iota(jnp.int32, (L, L), 1)
    causal = jnp.where(col > row, NEG_INF, 0.0).astype(jnp.float32)

    h = h_scr[...]                                                      # (M, dim)

    # ---- post-norm TransformerEncoderLayer for layer l_idx (dropout = identity) ----
    # fused QKV projection; 1/sqrt(hd) already folded into W_q / b_q host-side
    qkv = jnp.dot(h, wqkv_ref[0], preferred_element_type=jnp.float32) + bqkv_ref[0]
    q = qkv[:, :dim].reshape(bt, L, dim)
    k = qkv[:, dim:2 * dim].reshape(bt, L, dim)
    v = qkv[:, 2 * dim:].reshape(bt, L, dim)

    ctx = []
    for hh in range(heads):                       # static, small; batched over bt inside
        sl = slice(hh * hd, (hh + 1) * hd)
        s = jnp.einsum('bqd,bkd->bqk', q[:, :, sl], k[:, :, sl],
                       preferred_element_type=jnp.float32)
        s = s + causal[None, :, :]
        m = jnp.max(s, axis=-1, keepdims=True)
        p = jnp.exp(s - m)
        p = p * pl.reciprocal(jnp.sum(p, axis=-1, keepdims=True), approx=True)
        ctx.append(jnp.einsum('bqk,bkd->bqd', p, v[:, :, sl],
                              preferred_element_type=jnp.float32))
    ctx = jnp.concatenate(ctx, axis=-1).reshape(M, dim)

    # single fused output projection over all heads
    attn = jnp.dot(ctx, wo_ref[0], preferred_element_type=jnp.float32) + wob_ref[0]
    h = _layer_norm(h + attn, n1g_ref[0], n1b_ref[0])

    ff = jnp.dot(h, ff1w_ref[0], preferred_element_type=jnp.float32) + ff1b_ref[0]
    ff = jnp.maximum(ff, 0.0)                                           # ReLU FFN
    ff = jnp.dot(ff, ff2w_ref[0], preferred_element_type=jnp.float32) + ff2b_ref[0]
    h = _layer_norm(h + ff, n2g_ref[0], n2b_ref[0])
    h_scr[...] = h

    # ---- last layer step: output head, lane-dense (bt, L) store ----
    @pl.when(l_idx == pl.num_programs(1) - 1)
    def _():
        o = jnp.dot(h, h1w_ref[...], preferred_element_type=jnp.float32) + h1b_ref[...]
        o = _leaky_relu(o)
        o = jnp.dot(o, h2w_ref[...], preferred_element_type=jnp.float32) + h2b_ref[...]
        o = _leaky_relu(o)
        # Linear(dim, 1): elementwise multiply + lane reduce (avoids an N=1 matmul)
        o3 = o.reshape(bt, L, dim)
        logit = jnp.sum(o3 * h3w_ref[...][None, :, :], axis=-1) + h3b_ref[...]
        o_ref[...] = jax.nn.sigmoid(logit)


def _const_spec(shape):
    zeros = (0,) * len(shape)
    return pl.BlockSpec(tuple(shape), lambda b, l: zeros)


def _layer_spec(shape):
    # shape = (depth, ...): one layer per step along the trailing 'arbitrary' grid axis
    zeros = (0,) * (len(shape) - 1)
    return pl.BlockSpec((1,) + tuple(shape[1:]), lambda b, l: (l,) + zeros)


def _pick_block_b(B, L):
    # Pack enough sequences per grid step for MXU-sized M (~256 rows). The batch block
    # must equal B or be a multiple of 8 (sublane rule on the (Bt, L) output block).
    target = max(1, 256 // max(L, 1))
    if B <= target:
        return B
    for bt in range(min(B, target), 0, -1):
        if B % bt == 0 and bt % 8 == 0:
            return bt
    return B


def positional_encoding(L, dim):
    position = jnp.arange(L, dtype=jnp.float32)[:, None]
    div_term = 10000.0 ** (jnp.arange(0, dim, 2, dtype=jnp.float32) / dim)
    pe = jnp.zeros((L, dim), jnp.float32)
    pe = pe.at[:, 0::2].set(jnp.sin(position / div_term))
    pe = pe.at[:, 1::2].set(jnp.cos(position / div_term))
    return pe


def nn_d_forward(rel_traj, speed, target, params, *, heads):
    B, L, _ = rel_traj.shape
    x = jnp.concatenate([rel_traj, speed, target], axis=-1).astype(jnp.float32)  # (B, L, 6)
    dim = params["emb_w"].shape[1]
    depth = params["wqkv"].shape[0]
    bt = _pick_block_b(B, L)
    nb = B // bt
    pe = positional_encoding(L, dim)

    ordered = (x, pe,
               params["emb_w"], params["emb_b"],
               params["wqkv"], params["bqkv"], params["wo"], params["wob"],
               params["n1g"], params["n1b"],
               params["ff1w"], params["ff1b"], params["ff2w"], params["ff2b"],
               params["n2g"], params["n2b"],
               params["h1w"], params["h1b"], params["h2w"], params["h2b"],
               params["h3w"], params["h3b"])

    in_specs = [pl.BlockSpec((bt, L, 6), lambda b, l: (b, 0, 0)),
                _const_spec(pe.shape),
                _const_spec(params["emb_w"].shape), _const_spec(params["emb_b"].shape),
                _layer_spec(params["wqkv"].shape), _layer_spec(params["bqkv"].shape),
                _layer_spec(params["wo"].shape), _layer_spec(params["wob"].shape),
                _layer_spec(params["n1g"].shape), _layer_spec(params["n1b"].shape),
                _layer_spec(params["ff1w"].shape), _layer_spec(params["ff1b"].shape),
                _layer_spec(params["ff2w"].shape), _layer_spec(params["ff2b"].shape),
                _layer_spec(params["n2g"].shape), _layer_spec(params["n2b"].shape),
                _const_spec(params["h1w"].shape), _const_spec(params["h1b"].shape),
                _const_spec(params["h2w"].shape), _const_spec(params["h2b"].shape),
                _const_spec(params["h3w"].shape), _const_spec(params["h3b"].shape)]

    kernel = functools.partial(nn_d_kernel, heads=heads)
    out2d = pl.pallas_call(
        kernel,
        out_shape=jax.ShapeDtypeStruct((B, L), jnp.float32),
        grid=(nb, depth),
        in_specs=in_specs,
        out_specs=pl.BlockSpec((bt, L), lambda b, l: (b, 0)),
        scratch_shapes=[pltpu.VMEM((bt * L, dim), jnp.float32)],
        compiler_params=pltpu.CompilerParams(
            dimension_semantics=("parallel", "arbitrary"),
            vmem_limit_bytes=64 * 1024 * 1024),
    )(*ordered)
    return out2d[..., None]   # restore the module's (B, L, 1) output shape


def init_params(key, dim, mlp_dim, depth, heads):
    # PyTorch Linear stores (out, in); we store (in, out) so the kernel computes x @ W + b.
    # Attention weights are fused host-side into q|k|v along the output axis (lane-dense),
    # and the 1/sqrt(head_dim) attention scale is folded into W_q / b_q.
    hd = dim // heads
    ks = jax.random.split(key, 20)

    def n(k, shape, s=0.2):
        return jax.random.normal(k, shape, jnp.float32) * s

    inv_sqrt_hd = 1.0 / math.sqrt(hd)
    wq = n(ks[0], (depth, dim, dim)) * inv_sqrt_hd
    bq = n(ks[1], (depth, 1, dim), 0.05) * inv_sqrt_hd
    wk = n(ks[2], (depth, dim, dim))
    bk = n(ks[3], (depth, 1, dim), 0.05)
    wv = n(ks[4], (depth, dim, dim))
    bv = n(ks[5], (depth, 1, dim), 0.05)

    return {
        "emb_w": n(ks[6], (6, dim)),            "emb_b": n(ks[7], (1, dim), 0.05),
        "wqkv": jnp.concatenate([wq, wk, wv], axis=-1),    # (depth, dim, 3*dim)
        "bqkv": jnp.concatenate([bq, bk, bv], axis=-1),    # (depth, 1, 3*dim)
        "wo":  n(ks[8], (depth, dim, dim)),
        "wob": n(ks[9], (depth, 1, dim), 0.05),
        "n1g": jnp.ones((depth, 1, dim), jnp.float32),
        "n1b": jnp.zeros((depth, 1, dim), jnp.float32),
        "ff1w": n(ks[10], (depth, dim, mlp_dim)), "ff1b": n(ks[11], (depth, 1, mlp_dim), 0.05),
        "ff2w": n(ks[12], (depth, mlp_dim, dim)), "ff2b": n(ks[13], (depth, 1, dim), 0.05),
        "n2g": jnp.ones((depth, 1, dim), jnp.float32),
        "n2b": jnp.zeros((depth, 1, dim), jnp.float32),
        "h1w": n(ks[14], (dim, 4 * dim)),        "h1b": n(ks[15], (1, 4 * dim), 0.05),
        "h2w": n(ks[16], (4 * dim, dim)),        "h2b": n(ks[17], (1, dim), 0.05),
        "h3w": n(ks[18], (1, dim)),              "h3b": n(ks[19], (1, 1), 0.05),
    }


if __name__ == "__main__":
    key = jax.random.PRNGKey(0)
    k1, k2, k3, kw = jax.random.split(key, 4)

    B, L = 2, 8
    dim, mlp_dim, depth, heads = 32, 64, 2, 4
    assert dim % heads == 0 and dim % 2 == 0

    rel_traj = jax.random.normal(k1, (B, L, 2), jnp.float32)
    speed = jax.random.normal(k2, (B, L, 2), jnp.float32)
    target = jax.random.normal(k3, (B, L, 2), jnp.float32)
    params = init_params(kw, dim, mlp_dim, depth, heads)

    fwd = jax.jit(functools.partial(nn_d_forward, heads=heads))
    out = fwd(rel_traj, speed, target, params)   # (B, L, 1)
    jax.block_until_ready(out)
    assert out.shape == (B, L, 1)
    # TODO(synk): dropout layers are eval-mode identities (no stochastic masking in-kernel).
    print("KERNEL_OK")
</pallas_src>

<mosaic_0001>
module attributes {stable_mosaic.version = 11 : i64} {
  func.func @nn_d_kernel(%arg0: i32, %arg1: i32, %arg2: memref<2x8x6xf32, #tpu.memory_space<vmem>>, %arg3: memref<8x32xf32, #tpu.memory_space<vmem>>, %arg4: memref<6x32xf32, #tpu.memory_space<vmem>>, %arg5: memref<1x32xf32, #tpu.memory_space<vmem>>, %arg6: memref<1x32x96xf32, #tpu.memory_space<vmem>>, %arg7: memref<1x1x96xf32, #tpu.memory_space<vmem>>, %arg8: memref<1x32x32xf32, #tpu.memory_space<vmem>>, %arg9: memref<1x1x32xf32, #tpu.memory_space<vmem>>, %arg10: memref<1x1x32xf32, #tpu.memory_space<vmem>>, %arg11: memref<1x1x32xf32, #tpu.memory_space<vmem>>, %arg12: memref<1x32x64xf32, #tpu.memory_space<vmem>>, %arg13: memref<1x1x64xf32, #tpu.memory_space<vmem>>, %arg14: memref<1x64x32xf32, #tpu.memory_space<vmem>>, %arg15: memref<1x1x32xf32, #tpu.memory_space<vmem>>, %arg16: memref<1x1x32xf32, #tpu.memory_space<vmem>>, %arg17: memref<1x1x32xf32, #tpu.memory_space<vmem>>, %arg18: memref<32x128xf32, #tpu.memory_space<vmem>>, %arg19: memref<1x128xf32, #tpu.memory_space<vmem>>, %arg20: memref<128x32xf32, #tpu.memory_space<vmem>>, %arg21: memref<1x32xf32, #tpu.memory_space<vmem>>, %arg22: memref<1x32xf32, #tpu.memory_space<vmem>>, %arg23: memref<1x1xf32, #tpu.memory_space<vmem>>, %arg24: memref<2x8xf32, #tpu.memory_space<vmem>>, %arg25: memref<16x32xf32, #tpu.memory_space<vmem>>) attributes {dimension_semantics = [#tpu.dimension_semantics<parallel>, #tpu.dimension_semantics<arbitrary>], iteration_bounds = array<i64: 1, 2>, scalar_prefetch = 0 : i64, scratch_operands = 1 : i64, tpu.core_type = #tpu.core_type<tc>, window_params = [{transform_indices = @transform_0, window_bounds = array<i64: 2, 8, 6>}, {pipeline_mode = #tpu.pipeline_mode<synchronous>, transform_indices = @transform_1, window_bounds = array<i64: 8, 32>}, {pipeline_mode = #tpu.pipeline_mode<synchronous>, transform_indices = @transform_2, window_bounds = array<i64: 6, 32>}, {pipeline_mode = #tpu.pipeline_mode<synchronous>, transform_indices = @transform_3, window_bounds = array<i64: 1, 32>}, {transform_indices = @transform_4, window_bounds = array<i64: 1, 32, 96>}, {transform_indices = @transform_5, window_bounds = array<i64: 1, 1, 96>}, {transform_indices = @transform_6, window_bounds = array<i64: 1, 32, 32>}, {transform_indices = @transform_7, window_bounds = array<i64: 1, 1, 32>}, {transform_indices = @transform_8, window_bounds = array<i64: 1, 1, 32>}, {transform_indices = @transform_9, window_bounds = array<i64: 1, 1, 32>}, {transform_indices = @transform_10, window_bounds = array<i64: 1, 32, 64>}, {transform_indices = @transform_11, window_bounds = array<i64: 1, 1, 64>}, {transform_indices = @transform_12, window_bounds = array<i64: 1, 64, 32>}, {transform_indices = @transform_13, window_bounds = array<i64: 1, 1, 32>}, {transform_indices = @transform_14, window_bounds = array<i64: 1, 1, 32>}, {transform_indices = @transform_15, window_bounds = array<i64: 1, 1, 32>}, {pipeline_mode = #tpu.pipeline_mode<synchronous>, transform_indices = @transform_16, window_bounds = array<i64: 32, 128>}, {pipeline_mode = #tpu.pipeline_mode<synchronous>, transform_indices = @transform_17, window_bounds = array<i64: 1, 128>}, {pipeline_mode = #tpu.pipeline_mode<synchronous>, transform_indices = @transform_18, window_bounds = array<i64: 128, 32>}, {pipeline_mode = #tpu.pipeline_mode<synchronous>, transform_indices = @transform_19, window_bounds = array<i64: 1, 32>}, {pipeline_mode = #tpu.pipeline_mode<synchronous>, transform_indices = @transform_20, window_bounds = array<i64: 1, 32>}, {pipeline_mode = #tpu.pipeline_mode<synchronous>, transform_indices = @transform_21, window_bounds = array<i64: 1, 1>}, {transform_indices = @transform_22, window_bounds = array<i64: 2, 8>}]} {
    %c0_i32 = arith.constant 0 : i32
    %0 = arith.cmpi eq, %arg1, %c0_i32 : i32
    %1 = arith.extui %0 : i1 to i32
    %c0_i32_0 = arith.constant 0 : i32
    %2 = arith.cmpi ne, %1, %c0_i32_0 : i32
    scf.if %2 {
      %c0_73 = arith.constant 0 : index
      %c0_74 = arith.constant 0 : index
      %c0_75 = arith.constant 0 : index
      %174 = vector.load %arg2[%c0_73, %c0_74, %c0_75] : memref<2x8x6xf32, #tpu.memory_space<vmem>>, vector<2x8x6xf32>
      %175 = vector.shape_cast %174 : vector<2x8x6xf32> to vector<16x6xf32>
      %c0_76 = arith.constant 0 : index
      %c0_77 = arith.constant 0 : index
      %176 = vector.load %arg4[%c0_76, %c0_77] : memref<6x32xf32, #tpu.memory_space<vmem>>, vector<6x32xf32>
      %cst_78 = arith.constant dense<0.000000e+00> : vector<16x32xf32>
      %177 = tpu.matmul %175, %176, %cst_78 {dimension_numbers = #tpu.dot_dimension_numbers<[1], [0], [0], [1], [0, 0, 1, 1], [], []>} : vector<16x6xf32>, vector<6x32xf32>, vector<16x32xf32> -> vector<16x32xf32>
      %c0_79 = arith.constant 0 : index
      %c0_80 = arith.constant 0 : index
      %178 = vector.load %arg5[%c0_79, %c0_80] : memref<1x32xf32, #tpu.memory_space<vmem>>, vector<1x32xf32>
      %179 = vector.broadcast %178 : vector<1x32xf32> to vector<16x32xf32>
      %180 = arith.addf %177, %179 : vector<16x32xf32>
      %cst_81 = arith.constant 0.000000e+00 : f32
      %181 = vector.broadcast %cst_81 : f32 to vector<16x32xf32>
      %182 = arith.cmpf oge, %180, %181 : vector<16x32xf32>
      %cst_82 = arith.constant 0.00999999977 : f32
      %183 = vector.broadcast %cst_82 : f32 to vector<16x32xf32>
      %184 = arith.mulf %183, %180 : vector<16x32xf32>
      %185 = arith.select %182, %180, %184 : vector<16x32xi1>, vector<16x32xf32>
      %186 = vector.shape_cast %185 : vector<16x32xf32> to vector<2x8x32xf32>
      %c0_83 = arith.constant 0 : index
      %c0_84 = arith.constant 0 : index
      %187 = vector.load %arg3[%c0_83, %c0_84] : memref<8x32xf32, #tpu.memory_space<vmem>>, vector<8x32xf32>
      %188 = vector.shape_cast %187 : vector<8x32xf32> to vector<1x8x32xf32>
      %189 = vector.broadcast %188 : vector<1x8x32xf32> to vector<2x8x32xf32>
      %190 = arith.addf %186, %189 : vector<2x8x32xf32>
      %191 = vector.shape_cast %190 : vector<2x8x32xf32> to vector<16x32xf32>
      %c0_85 = arith.constant 0 : index
      %c0_86 = arith.constant 0 : index
      %192 = vector.load %arg25[%c0_85, %c0_86] : memref<16x32xf32, #tpu.memory_space<vmem>>, vector<16x32xf32>
      tpu.vector_store %arg25[%c0_85, %c0_86], %191 {strides = array<i32>} : memref<16x32xf32, #tpu.memory_space<vmem>>, vector<16x32xf32>,
    } else {
    }
    %3 = tpu.iota {dimensions = array<i32: 0>} : vector<8x8xi32>
    %4 = tpu.iota {dimensions = array<i32: 1>} : vector<8x8xi32>
    %5 = arith.cmpi sgt, %4, %3 : vector<8x8xi32>
    %cst = arith.constant -1.000000e+30 : f32
    %cst_1 = arith.constant 0.000000e+00 : f32
    %6 = vector.broadcast %cst : f32 to vector<8x8xf32>
    %7 = vector.broadcast %cst_1 : f32 to vector<8x8xf32>
    %8 = arith.select %5, %6, %7 : vector<8x8xi1>, vector<8x8xf32>
    %c0 = arith.constant 0 : index
    %c0_2 = arith.constant 0 : index
    %9 = vector.load %arg25[%c0, %c0_2] : memref<16x32xf32, #tpu.memory_space<vmem>>, vector<16x32xf32>
    %c0_3 = arith.constant 0 : index
    %c0_4 = arith.constant 0 : index
    %c0_5 = arith.constant 0 : index
    %10 = vector.load %arg6[%c0_3, %c0_4, %c0_5] : memref<1x32x96xf32, #tpu.memory_space<vmem>>, vector<1x32x96xf32>
    %11 = vector.shape_cast %10 : vector<1x32x96xf32> to vector<32x96xf32>
    %cst_6 = arith.constant dense<0.000000e+00> : vector<16x96xf32>
    %12 = tpu.matmul %9, %11, %cst_6 {dimension_numbers = #tpu.dot_dimension_numbers<[1], [0], [0], [1], [0, 0, 1, 1], [], []>} : vector<16x32xf32>, vector<32x96xf32>, vector<16x96xf32> -> vector<16x96xf32>
    %c0_7 = arith.constant 0 : index
    %c0_8 = arith.constant 0 : index
    %c0_9 = arith.constant 0 : index
    %13 = vector.load %arg7[%c0_7, %c0_8, %c0_9] : memref<1x1x96xf32, #tpu.memory_space<vmem>>, vector<1x1x96xf32>
    %14 = vector.shape_cast %13 : vector<1x1x96xf32> to vector<1x96xf32>
    %15 = vector.broadcast %14 : vector<1x96xf32> to vector<16x96xf32>
    %16 = arith.addf %12, %15 : vector<16x96xf32>
    %17 = vector.extract_strided_slice %16 {offsets = [0, 0], sizes = [16, 32], strides = [1, 1]} : vector<16x96xf32> to vector<16x32xf32>
    %18 = vector.shape_cast %17 : vector<16x32xf32> to vector<2x8x32xf32>
    %19 = vector.extract_strided_slice %16 {offsets = [0, 32], sizes = [16, 32], strides = [1, 1]} : vector<16x96xf32> to vector<16x32xf32>
    %20 = vector.shape_cast %19 : vector<16x32xf32> to vector<2x8x32xf32>
    %21 = vector.extract_strided_slice %16 {offsets = [0, 64], sizes = [16, 32], strides = [1, 1]} : vector<16x96xf32> to vector<16x32xf32>
    %22 = vector.shape_cast %21 : vector<16x32xf32> to vector<2x8x32xf32>
    %23 = vector.extract_strided_slice %18 {offsets = [0, 0, 0], sizes = [2, 8, 8], strides = [1, 1, 1]} : vector<2x8x32xf32> to vector<2x8x8xf32>
    %24 = vector.extract_strided_slice %20 {offsets = [0, 0, 0], sizes = [2, 8, 8], strides = [1, 1, 1]} : vector<2x8x32xf32> to vector<2x8x8xf32>
    "tpu.trace_start"() <{level = 10 : i32, message = "bqd,bkd->bqk"}> : () -> ()
    %cst_10 = arith.constant dense<0.000000e+00> : vector<2x8x8xf32>
    %25 = tpu.matmul %23, %24, %cst_10 {dimension_numbers = #tpu.dot_dimension_numbers<[2], [2], [1], [1], [0, 0, 0, 1, 1, 1], [0], [0]>} : vector<2x8x8xf32>, vector<2x8x8xf32>, vector<2x8x8xf32> -> vector<2x8x8xf32>
    "tpu.trace_stop"() : () -> ()
    %26 = vector.shape_cast %8 : vector<8x8xf32> to vector<1x8x8xf32>
    %27 = vector.broadcast %26 : vector<1x8x8xf32> to vector<2x8x8xf32>
    %28 = arith.addf %25, %27 : vector<2x8x8xf32>
    %cst_11 = arith.constant dense<0xFF800000> : vector<2x8xf32>
    %29 = vector.multi_reduction <maximumf>, %28, %cst_11 [2] : vector<2x8x8xf32> to vector<2x8xf32>
    %30 = vector.shape_cast %29 : vector<2x8xf32> to vector<2x8x1xf32>
    %31 = vector.broadcast %30 : vector<2x8x1xf32> to vector<2x8x8xf32>
    %32 = arith.subf %28, %31 : vector<2x8x8xf32>
    %33 = math.exp %32 : vector<2x8x8xf32>
    %cst_12 = arith.constant dense<0.000000e+00> : vector<2x8xf32>
    %34 = vector.multi_reduction <add>, %33, %cst_12 [2] : vector<2x8x8xf32> to vector<2x8xf32>
    %35 = vector.shape_cast %34 : vector<2x8xf32> to vector<2x8x1xf32>
    %36 = tpu.reciprocal %35 {approx = true} : vector<2x8x1xf32> -> vector<2x8x1xf32>
    %37 = vector.broadcast %36 : vector<2x8x1xf32> to vector<2x8x8xf32>
    %38 = arith.mulf %33, %37 : vector<2x8x8xf32>
    %39 = vector.extract_strided_slice %22 {offsets = [0, 0, 0], sizes = [2, 8, 8], strides = [1, 1, 1]} : vector<2x8x32xf32> to vector<2x8x8xf32>
    "tpu.trace_start"() <{level = 10 : i32, message = "bqk,bkd->bqd"}> : () -> ()
    %cst_13 = arith.constant dense<0.000000e+00> : vector<2x8x8xf32>
    %40 = tpu.matmul %38, %39, %cst_13 {dimension_numbers = #tpu.dot_dimension_numbers<[2], [1], [1], [2], [0, 0, 0, 1, 1, 2], [0], [0]>} : vector<2x8x8xf32>, vector<2x8x8xf32>, vector<2x8x8xf32> -> vector<2x8x8xf32>
    "tpu.trace_stop"() : () -> ()
    %41 = vector.extract_strided_slice %18 {offsets = [0, 0, 8], sizes = [2, 8, 8], strides = [1, 1, 1]} : vector<2x8x32xf32> to vector<2x8x8xf32>
    %42 = vector.extract_strided_slice %20 {offsets = [0, 0, 8], sizes = [2, 8, 8], strides = [1, 1, 1]} : vector<2x8x32xf32> to vector<2x8x8xf32>
    "tpu.trace_start"() <{level = 10 : i32, message = "bqd,bkd->bqk"}> : () -> ()
    %cst_14 = arith.constant dense<0.000000e+00> : vector<2x8x8xf32>
    %43 = tpu.matmul %41, %42, %cst_14 {dimension_numbers = #tpu.dot_dimension_numbers<[2], [2], [1], [1], [0, 0, 0, 1, 1, 1], [0], [0]>} : vector<2x8x8xf32>, vector<2x8x8xf32>, vector<2x8x8xf32> -> vector<2x8x8xf32>
    "tpu.trace_stop"() : () -> ()
    %44 = vector.shape_cast %8 : vector<8x8xf32> to vector<1x8x8xf32>
    %45 = vector.broadcast %44 : vector<1x8x8xf32> to vector<2x8x8xf32>
    %46 = arith.addf %43, %45 : vector<2x8x8xf32>
    %cst_15 = arith.constant dense<0xFF800000> : vector<2x8xf32>
    %47 = vector.multi_reduction <maximumf>, %46, %cst_15 [2] : vector<2x8x8xf32> to vector<2x8xf32>
    %48 = vector.shape_cast %47 : vector<2x8xf32> to vector<2x8x1xf32>
    %49 = vector.broadcast %48 : vector<2x8x1xf32> to vector<2x8x8xf32>
    %50 = arith.subf %46, %49 : vector<2x8x8xf32>
    %51 = math.exp %50 : vector<2x8x8xf32>
    %cst_16 = arith.constant dense<0.000000e+00> : vector<2x8xf32>
    %52 = vector.multi_reduction <add>, %51, %cst_16 [2] : vector<2x8x8xf32> to vector<2x8xf32>
    %53 = vector.shape_cast %52 : vector<2x8xf32> to vector<2x8x1xf32>
    %54 = tpu.reciprocal %53 {approx = true} : vector<2x8x1xf32> -> vector<2x8x1xf32>
    %55 = vector.broadcast %54 : vector<2x8x1xf32> to vector<2x8x8xf32>
    %56 = arith.mulf %51, %55 : vector<2x8x8xf32>
    %57 = vector.extract_strided_slice %22 {offsets = [0, 0, 8], sizes = [2, 8, 8], strides = [1, 1, 1]} : vector<2x8x32xf32> to vector<2x8x8xf32>
    "tpu.trace_start"() <{level = 10 : i32, message = "bqk,bkd->bqd"}> : () -> ()
    %cst_17 = arith.constant dense<0.000000e+00> : vector<2x8x8xf32>
    %58 = tpu.matmul %56, %57, %cst_17 {dimension_numbers = #tpu.dot_dimension_numbers<[2], [1], [1], [2], [0, 0, 0, 1, 1, 2], [0], [0]>} : vector<2x8x8xf32>, vector<2x8x8xf32>, vector<2x8x8xf32> -> vector<2x8x8xf32>
    "tpu.trace_stop"() : () -> ()
    %59 = vector.extract_strided_slice %18 {offsets = [0, 0, 16], sizes = [2, 8, 8], strides = [1, 1, 1]} : vector<2x8x32xf32> to vector<2x8x8xf32>
    %60 = vector.extract_strided_slice %20 {offsets = [0, 0, 16], sizes = [2, 8, 8], strides = [1, 1, 1]} : vector<2x8x32xf32> to vector<2x8x8xf32>
    "tpu.trace_start"() <{level = 10 : i32, message = "bqd,bkd->bqk"}> : () -> ()
    %cst_18 = arith.constant dense<0.000000e+00> : vector<2x8x8xf32>
    %61 = tpu.matmul %59, %60, %cst_18 {dimension_numbers = #tpu.dot_dimension_numbers<[2], [2], [1], [1], [0, 0, 0, 1, 1, 1], [0], [0]>} : vector<2x8x8xf32>, vector<2x8x8xf32>, vector<2x8x8xf32> -> vector<2x8x8xf32>
    "tpu.trace_stop"() : () -> ()
    %62 = vector.shape_cast %8 : vector<8x8xf32> to vector<1x8x8xf32>
    %63 = vector.broadcast %62 : vector<1x8x8xf32> to vector<2x8x8xf32>
    %64 = arith.addf %61, %63 : vector<2x8x8xf32>
    %cst_19 = arith.constant dense<0xFF800000> : vector<2x8xf32>
    %65 = vector.multi_reduction <maximumf>, %64, %cst_19 [2] : vector<2x8x8xf32> to vector<2x8xf32>
    %66 = vector.shape_cast %65 : vector<2x8xf32> to vector<2x8x1xf32>
    %67 = vector.broadcast %66 : vector<2x8x1xf32> to vector<2x8x8xf32>
    %68 = arith.subf %64, %67 : vector<2x8x8xf32>
    %69 = math.exp %68 : vector<2x8x8xf32>
    %cst_20 = arith.constant dense<0.000000e+00> : vector<2x8xf32>
    %70 = vector.multi_reduction <add>, %69, %cst_20 [2] : vector<2x8x8xf32> to vector<2x8xf32>
    %71 = vector.shape_cast %70 : vector<2x8xf32> to vector<2x8x1xf32>
    %72 = tpu.reciprocal %71 {approx = true} : vector<2x8x1xf32> -> vector<2x8x1xf32>
    %73 = vector.broadcast %72 : vector<2x8x1xf32> to vector<2x8x8xf32>
    %74 = arith.mulf %69, %73 : vector<2x8x8xf32>
    %75 = vector.extract_strided_slice %22 {offsets = [0, 0, 16], sizes = [2, 8, 8], strides = [1, 1, 1]} : vector<2x8x32xf32> to vector<2x8x8xf32>
    "tpu.trace_start"() <{level = 10 : i32, message = "bqk,bkd->bqd"}> : () -> ()
    %cst_21 = arith.constant dense<0.000000e+00> : vector<2x8x8xf32>
    %76 = tpu.matmul %74, %75, %cst_21 {dimension_numbers = #tpu.dot_dimension_numbers<[2], [1], [1], [2], [0, 0, 0, 1, 1, 2], [0], [0]>} : vector<2x8x8xf32>, vector<2x8x8xf32>, vector<2x8x8xf32> -> vector<2x8x8xf32>
    "tpu.trace_stop"() : () -> ()
    %77 = vector.extract_strided_slice %18 {offsets = [0, 0, 24], sizes = [2, 8, 8], strides = [1, 1, 1]} : vector<2x8x32xf32> to vector<2x8x8xf32>
    %78 = vector.extract_strided_slice %20 {offsets = [0, 0, 24], sizes = [2, 8, 8], strides = [1, 1, 1]} : vector<2x8x32xf32> to vector<2x8x8xf32>
    "tpu.trace_start"() <{level = 10 : i32, message = "bqd,bkd->bqk"}> : () -> ()
    %cst_22 = arith.constant dense<0.000000e+00> : vector<2x8x8xf32>
    %79 = tpu.matmul %77, %78, %cst_22 {dimension_numbers = #tpu.dot_dimension_numbers<[2], [2], [1], [1], [0, 0, 0, 1, 1, 1], [0], [0]>} : vector<2x8x8xf32>, vector<2x8x8xf32>, vector<2x8x8xf32> -> vector<2x8x8xf32>
    "tpu.trace_stop"() : () -> ()
    %80 = vector.shape_cast %8 : vector<8x8xf32> to vector<1x8x8xf32>
    %81 = vector.broadcast %80 : vector<1x8x8xf32> to vector<2x8x8xf32>
    %82 = arith.addf %79, %81 : vector<2x8x8xf32>
    %cst_23 = arith.constant dense<0xFF800000> : vector<2x8xf32>
    %83 = vector.multi_reduction <maximumf>, %82, %cst_23 [2] : vector<2x8x8xf32> to vector<2x8xf32>
    %84 = vector.shape_cast %83 : vector<2x8xf32> to vector<2x8x1xf32>
    %85 = vector.broadcast %84 : vector<2x8x1xf32> to vector<2x8x8xf32>
    %86 = arith.subf %82, %85 : vector<2x8x8xf32>
    %87 = math.exp %86 : vector<2x8x8xf32>
    %cst_24 = arith.constant dense<0.000000e+00> : vector<2x8xf32>
    %88 = vector.multi_reduction <add>, %87, %cst_24 [2] : vector<2x8x8xf32> to vector<2x8xf32>
    %89 = vector.shape_cast %88 : vector<2x8xf32> to vector<2x8x1xf32>
    %90 = tpu.reciprocal %89 {approx = true} : vector<2x8x1xf32> -> vector<2x8x1xf32>
    %91 = vector.broadcast %90 : vector<2x8x1xf32> to vector<2x8x8xf32>
    %92 = arith.mulf %87, %91 : vector<2x8x8xf32>
    %93 = vector.extract_strided_slice %22 {offsets = [0, 0, 24], sizes = [2, 8, 8], strides = [1, 1, 1]} : vector<2x8x32xf32> to vector<2x8x8xf32>
    "tpu.trace_start"() <{level = 10 : i32, message = "bqk,bkd->bqd"}> : () -> ()
    %cst_25 = arith.constant dense<0.000000e+00> : vector<2x8x8xf32>
    %94 = tpu.matmul %92, %93, %cst_25 {dimension_numbers = #tpu.dot_dimension_numbers<[2], [1], [1], [2], [0, 0, 0, 1, 1, 2], [0], [0]>} : vector<2x8x8xf32>, vector<2x8x8xf32>, vector<2x8x8xf32> -> vector<2x8x8xf32>
    "tpu.trace_stop"() : () -> ()
    %95 = tpu.concatenate %40, %58, %76, %94 in 2 : vector<2x8x8xf32>, vector<2x8x8xf32>, vector<2x8x8xf32>, vector<2x8x8xf32> -> vector<2x8x32xf32>
    %96 = vector.shape_cast %95 : vector<2x8x32xf32> to vector<16x32xf32>
    %c0_26 = arith.constant 0 : index
    %c0_27 = arith.constant 0 : index
    %c0_28 = arith.constant 0 : index
    %97 = vector.load %arg8[%c0_26, %c0_27, %c0_28] : memref<1x32x32xf32, #tpu.memory_space<vmem>>, vector<1x32x32xf32>
    %98 = vector.shape_cast %97 : vector<1x32x32xf32> to vector<32x32xf32>
    %cst_29 = arith.constant dense<0.000000e+00> : vector<16x32xf32>
    %99 = tpu.matmul %96, %98, %cst_29 {dimension_numbers = #tpu.dot_dimension_numbers<[1], [0], [0], [1], [0, 0, 1, 1], [], []>} : vector<16x32xf32>, vector<32x32xf32>, vector<16x32xf32> -> vector<16x32xf32>
    %c0_30 = arith.constant 0 : index
    %c0_31 = arith.constant 0 : index
    %c0_32 = arith.constant 0 : index
    %100 = vector.load %arg9[%c0_30, %c0_31, %c0_32] : memref<1x1x32xf32, #tpu.memory_space<vmem>>, vector<1x1x32xf32>
    %101 = vector.shape_cast %100 : vector<1x1x32xf32> to vector<1x32xf32>
    %102 = vector.broadcast %101 : vector<1x32xf32> to vector<16x32xf32>
    %103 = arith.addf %99, %102 : vector<16x32xf32>
    %104 = arith.addf %9, %103 : vector<16x32xf32>
    %c0_33 = arith.constant 0 : index
    %c0_34 = arith.constant 0 : index
    %c0_35 = arith.constant 0 : index
    %105 = vector.load %arg10[%c0_33, %c0_34, %c0_35] : memref<1x1x32xf32, #tpu.memory_space<vmem>>, vector<1x1x32xf32>
    %106 = vector.shape_cast %105 : vector<1x1x32xf32> to vector<1x32xf32>
    %c0_36 = arith.constant 0 : index
    %c0_37 = arith.constant 0 : index
    %c0_38 = arith.constant 0 : index
    %107 = vector.load %arg11[%c0_36, %c0_37, %c0_38] : memref<1x1x32xf32, #tpu.memory_space<vmem>>, vector<1x1x32xf32>
    %108 = vector.shape_cast %107 : vector<1x1x32xf32> to vector<1x32xf32>
    %cst_39 = arith.constant dense<0.000000e+00> : vector<16xf32>
    %109 = vector.multi_reduction <add>, %104, %cst_39 [1] : vector<16x32xf32> to vector<16xf32>
    %110 = vector.shape_cast %109 : vector<16xf32> to vector<16x1xf32>
    %cst_40 = arith.constant 3.200000e+01 : f32
    %111 = vector.broadcast %cst_40 : f32 to vector<16x1xf32>
    %112 = arith.divf %110, %111 : vector<16x1xf32>
    %113 = vector.broadcast %112 : vector<16x1xf32> to vector<16x32xf32>
    %114 = arith.subf %104, %113 : vector<16x32xf32>
    %115 = arith.mulf %114, %114 : vector<16x32xf32>
    %cst_41 = arith.constant dense<0.000000e+00> : vector<16xf32>
    %116 = vector.multi_reduction <add>, %115, %cst_41 [1] : vector<16x32xf32> to vector<16xf32>
    %117 = vector.shape_cast %116 : vector<16xf32> to vector<16x1xf32>
    %cst_42 = arith.constant 3.200000e+01 : f32
    %118 = vector.broadcast %cst_42 : f32 to vector<16x1xf32>
    %119 = arith.divf %117, %118 : vector<16x1xf32>
    %cst_43 = arith.constant 9.99999974E-6 : f32
    %120 = vector.broadcast %cst_43 : f32 to vector<16x1xf32>
    %121 = arith.addf %119, %120 : vector<16x1xf32>
    %122 = math.rsqrt %121 : vector<16x1xf32>
    %123 = vector.broadcast %122 : vector<16x1xf32> to vector<16x32xf32>
    %124 = arith.mulf %114, %123 : vector<16x32xf32>
    %125 = vector.broadcast %106 : vector<1x32xf32> to vector<16x32xf32>
    %126 = arith.mulf %124, %125 : vector<16x32xf32>
    %127 = vector.broadcast %108 : vector<1x32xf32> to vector<16x32xf32>
    %128 = arith.addf %126, %127 : vector<16x32xf32>
    %c0_44 = arith.constant 0 : index
    %c0_45 = arith.constant 0 : index
    %c0_46 = arith.constant 0 : index
    %129 = vector.load %arg12[%c0_44, %c0_45, %c0_46] : memref<1x32x64xf32, #tpu.memory_space<vmem>>, vector<1x32x64xf32>
    %130 = vector.shape_cast %129 : vector<1x32x64xf32> to vector<32x64xf32>
    %cst_47 = arith.constant dense<0.000000e+00> : vector<16x64xf32>
    %131 = tpu.matmul %128, %130, %cst_47 {dimension_numbers = #tpu.dot_dimension_numbers<[1], [0], [0], [1], [0, 0, 1, 1], [], []>} : vector<16x32xf32>, vector<32x64xf32>, vector<16x64xf32> -> vector<16x64xf32>
    %c0_48 = arith.constant 0 : index
    %c0_49 = arith.constant 0 : index
    %c0_50 = arith.constant 0 : index
    %132 = vector.load %arg13[%c0_48, %c0_49, %c0_50] : memref<1x1x64xf32, #tpu.memory_space<vmem>>, vector<1x1x64xf32>
    %133 = vector.shape_cast %132 : vector<1x1x64xf32> to vector<1x64xf32>
    %134 = vector.broadcast %133 : vector<1x64xf32> to vector<16x64xf32>
    %135 = arith.addf %131, %134 : vector<16x64xf32>
    %cst_51 = arith.constant 0.000000e+00 : f32
    %136 = vector.broadcast %cst_51 : f32 to vector<16x64xf32>
    %137 = arith.maximumf %135, %136 : vector<16x64xf32>
    %c0_52 = arith.constant 0 : index
    %c0_53 = arith.constant 0 : index
    %c0_54 = arith.constant 0 : index
    %138 = vector.load %arg14[%c0_52, %c0_53, %c0_54] : memref<1x64x32xf32, #tpu.memory_space<vmem>>, vector<1x64x32xf32>
    %139 = vector.shape_cast %138 : vector<1x64x32xf32> to vector<64x32xf32>
    %cst_55 = arith.constant dense<0.000000e+00> : vector<16x32xf32>
    %140 = tpu.matmul %137, %139, %cst_55 {dimension_numbers = #tpu.dot_dimension_numbers<[1], [0], [0], [1], [0, 0, 1, 1], [], []>} : vector<16x64xf32>, vector<64x32xf32>, vector<16x32xf32> -> vector<16x32xf32>
    %c0_56 = arith.constant 0 : index
    %c0_57 = arith.constant 0 : index
    %c0_58 = arith.constant 0 : index
    %141 = vector.load %arg15[%c0_56, %c0_57, %c0_58] : memref<1x1x32xf32, #tpu.memory_space<vmem>>, vector<1x1x32xf32>
    %142 = vector.shape_cast %141 : vector<1x1x32xf32> to vector<1x32xf32>
    %143 = vector.broadcast %142 : vector<1x32xf32> to vector<16x32xf32>
    %144 = arith.addf %140, %143 : vector<16x32xf32>
    %145 = arith.addf %128, %144 : vector<16x32xf32>
    %c0_59 = arith.constant 0 : index
    %c0_60 = arith.constant 0 : index
    %c0_61 = arith.constant 0 : index
    %146 = vector.load %arg16[%c0_59, %c0_60, %c0_61] : memref<1x1x32xf32, #tpu.memory_space<vmem>>, vector<1x1x32xf32>
    %147 = vector.shape_cast %146 : vector<1x1x32xf32> to vector<1x32xf32>
    %c0_62 = arith.constant 0 : index
    %c0_63 = arith.constant 0 : index
    %c0_64 = arith.constant 0 : index
    %148 = vector.load %arg17[%c0_62, %c0_63, %c0_64] : memref<1x1x32xf32, #tpu.memory_space<vmem>>, vector<1x1x32xf32>
    %149 = vector.shape_cast %148 : vector<1x1x32xf32> to vector<1x32xf32>
    %cst_65 = arith.constant dense<0.000000e+00> : vector<16xf32>
    %150 = vector.multi_reduction <add>, %145, %cst_65 [1] : vector<16x32xf32> to vector<16xf32>
    %151 = vector.shape_cast %150 : vector<16xf32> to vector<16x1xf32>
    %cst_66 = arith.constant 3.200000e+01 : f32
    %152 = vector.broadcast %cst_66 : f32 to vector<16x1xf32>
    %153 = arith.divf %151, %152 : vector<16x1xf32>
    %154 = vector.broadcast %153 : vector<16x1xf32> to vector<16x32xf32>
    %155 = arith.subf %145, %154 : vector<16x32xf32>
    %156 = arith.mulf %155, %155 : vector<16x32xf32>
    %cst_67 = arith.constant dense<0.000000e+00> : vector<16xf32>
    %157 = vector.multi_reduction <add>, %156, %cst_67 [1] : vector<16x32xf32> to vector<16xf32>
    %158 = vector.shape_cast %157 : vector<16xf32> to vector<16x1xf32>
    %cst_68 = arith.constant 3.200000e+01 : f32
    %159 = vector.broadcast %cst_68 : f32 to vector<16x1xf32>
    %160 = arith.divf %158, %159 : vector<16x1xf32>
    %cst_69 = arith.constant 9.99999974E-6 : f32
    %161 = vector.broadcast %cst_69 : f32 to vector<16x1xf32>
    %162 = arith.addf %160, %161 : vector<16x1xf32>
    %163 = math.rsqrt %162 : vector<16x1xf32>
    %164 = vector.broadcast %163 : vector<16x1xf32> to vector<16x32xf32>
    %165 = arith.mulf %155, %164 : vector<16x32xf32>
    %166 = vector.broadcast %147 : vector<1x32xf32> to vector<16x32xf32>
    %167 = arith.mulf %165, %166 : vector<16x32xf32>
    %168 = vector.broadcast %149 : vector<1x32xf32> to vector<16x32xf32>
    %169 = arith.addf %167, %168 : vector<16x32xf32>
    %c0_70 = arith.constant 0 : index
    %c0_71 = arith.constant 0 : index
    %170 = vector.load %arg25[%c0_70, %c0_71] : memref<16x32xf32, #tpu.memory_space<vmem>>, vector<16x32xf32>
    tpu.vector_store %arg25[%c0_70, %c0_71], %169 {strides = array<i32>} : memref<16x32xf32, #tpu.memory_space<vmem>>, vector<16x32xf32>,
    %c1_i32 = arith.constant 1 : i32
    %171 = arith.cmpi eq, %arg1, %c1_i32 : i32
    %172 = arith.extui %171 : i1 to i32
    %c0_i32_72 = arith.constant 0 : i32
    %173 = arith.cmpi ne, %172, %c0_i32_72 : i32
    scf.if %173 {
      %c0_73 = arith.constant 0 : index
      %c0_74 = arith.constant 0 : index
      %174 = vector.load %arg18[%c0_73, %c0_74] : memref<32x128xf32, #tpu.memory_space<vmem>>, vector<32x128xf32>
      %cst_75 = arith.constant dense<0.000000e+00> : vector<16x128xf32>
      %175 = tpu.matmul %169, %174, %cst_75 {dimension_numbers = #tpu.dot_dimension_numbers<[1], [0], [0], [1], [0, 0, 1, 1], [], []>} : vector<16x32xf32>, vector<32x128xf32>, vector<16x128xf32> -> vector<16x128xf32>
      %c0_76 = arith.constant 0 : index
      %c0_77 = arith.constant 0 : index
      %176 = vector.load %arg19[%c0_76, %c0_77] : memref<1x128xf32, #tpu.memory_space<vmem>>, vector<1x128xf32>
      %177 = vector.broadcast %176 : vector<1x128xf32> to vector<16x128xf32>
      %178 = arith.addf %175, %177 : vector<16x128xf32>
      %cst_78 = arith.constant 0.000000e+00 : f32
      %179 = vector.broadcast %cst_78 : f32 to vector<16x128xf32>
      %180 = arith.cmpf oge, %178, %179 : vector<16x128xf32>
      %cst_79 = arith.constant 0.00999999977 : f32
      %181 = vector.broadcast %cst_79 : f32 to vector<16x128xf32>
      %182 = arith.mulf %181, %178 : vector<16x128xf32>
      %183 = arith.select %180, %178, %182 : vector<16x128xi1>, vector<16x128xf32>
      %c0_80 = arith.constant 0 : index
      %c0_81 = arith.constant 0 : index
      %184 = vector.load %arg20[%c0_80, %c0_81] : memref<128x32xf32, #tpu.memory_space<vmem>>, vector<128x32xf32>
      %cst_82 = arith.constant dense<0.000000e+00> : vector<16x32xf32>
      %185 = tpu.matmul %183, %184, %cst_82 {dimension_numbers = #tpu.dot_dimension_numbers<[1], [0], [0], [1], [0, 0, 1, 1], [], []>} : vector<16x128xf32>, vector<128x32xf32>, vector<16x32xf32> -> vector<16x32xf32>
      %c0_83 = arith.constant 0 : index
      %c0_84 = arith.constant 0 : index
      %186 = vector.load %arg21[%c0_83, %c0_84] : memref<1x32xf32, #tpu.memory_space<vmem>>, vector<1x32xf32>
      %187 = vector.broadcast %186 : vector<1x32xf32> to vector<16x32xf32>
      %188 = arith.addf %185, %187 : vector<16x32xf32>
      %cst_85 = arith.constant 0.000000e+00 : f32
      %189 = vector.broadcast %cst_85 : f32 to vector<16x32xf32>
      %190 = arith.cmpf oge, %188, %189 : vector<16x32xf32>
      %cst_86 = arith.constant 0.00999999977 : f32
      %191 = vector.broadcast %cst_86 : f32 to vector<16x32xf32>
      %192 = arith.mulf %191, %188 : vector<16x32xf32>
      %193 = arith.select %190, %188, %192 : vector<16x32xi1>, vector<16x32xf32>
      %194 = vector.shape_cast %193 : vector<16x32xf32> to vector<2x8x32xf32>
      %c0_87 = arith.constant 0 : index
      %c0_88 = arith.constant 0 : index
      %195 = vector.load %arg22[%c0_87, %c0_88] : memref<1x32xf32, #tpu.memory_space<vmem>>, vector<1x32xf32>
      %196 = vector.shape_cast %195 : vector<1x32xf32> to vector<1x1x32xf32>
      %197 = vector.broadcast %196 : vector<1x1x32xf32> to vector<2x8x32xf32>
      %198 = arith.mulf %194, %197 : vector<2x8x32xf32>
      %cst_89 = arith.constant dense<0.000000e+00> : vector<2x8xf32>
      %199 = vector.multi_reduction <add>, %198, %cst_89 [2] : vector<2x8x32xf32> to vector<2x8xf32>
      %c0_90 = arith.constant 0 : index
      %c0_91 = arith.constant 0 : index
      %200 = vector.load %arg23[%c0_90, %c0_91] : memref<1x1xf32, #tpu.memory_space<vmem>>, vector<1x1xf32>
      %201 = vector.broadcast %200 : vector<1x1xf32> to vector<2x8xf32>
      %202 = arith.addf %199, %201 : vector<2x8xf32>
      %203 = arith.negf %202 : vector<2x8xf32>
      %204 = math.exp %203 : vector<2x8xf32>
      %cst_92 = arith.constant 1.000000e+00 : f32
      %205 = vector.broadcast %cst_92 : f32 to vector<2x8xf32>
      %206 = arith.addf %205, %204 : vector<2x8xf32>
      %207 = arith.divf %205, %206 : vector<2x8xf32>
      %c0_93 = arith.constant 0 : index
      %c0_94 = arith.constant 0 : index
      %208 = vector.load %arg24[%c0_93, %c0_94] : memref<2x8xf32, #tpu.memory_space<vmem>>, vector<2x8xf32>
      tpu.vector_store %arg24[%c0_93, %c0_94], %207 {strides = array<i32>} : memref<2x8xf32, #tpu.memory_space<vmem>>, vector<2x8xf32>,
    } else {
    }
    return
  }
  func.func @transform_0(%arg0: i32, %arg1: i32) -> (i32, i32, i32) {
    %c0_i32 = arith.constant 0 : i32
    %c0_i32_0 = arith.constant 0 : i32
    %c0_i32_1 = arith.constant 0 : i32
    return %arg0, %c0_i32, %c0_i32_0 : i32, i32, i32
  }
  func.func @transform_1(%arg0: i32, %arg1: i32) -> (i32, i32) {
    %c0_i32 = arith.constant 0 : i32
    %c0_i32_0 = arith.constant 0 : i32
    %c0_i32_1 = arith.constant 0 : i32
    return %c0_i32, %c0_i32_0 : i32, i32
  }
  func.func @transform_2(%arg0: i32, %arg1: i32) -> (i32, i32) {
    %c0_i32 = arith.constant 0 : i32
    %c0_i32_0 = arith.constant 0 : i32
    %c0_i32_1 = arith.constant 0 : i32
    return %c0_i32, %c0_i32_0 : i32, i32
  }
  func.func @transform_3(%arg0: i32, %arg1: i32) -> (i32, i32) {
    %c0_i32 = arith.constant 0 : i32
    %c0_i32_0 = arith.constant 0 : i32
    %c0_i32_1 = arith.constant 0 : i32
    return %c0_i32, %c0_i32_0 : i32, i32
  }
  func.func @transform_4(%arg0: i32, %arg1: i32) -> (i32, i32, i32) {
    %c0_i32 = arith.constant 0 : i32
    %c0_i32_0 = arith.constant 0 : i32
    %c0_i32_1 = arith.constant 0 : i32
    return %arg1, %c0_i32, %c0_i32_0 : i32, i32, i32
  }
  func.func @transform_5(%arg0: i32, %arg1: i32) -> (i32, i32, i32) {
    %c0_i32 = arith.constant 0 : i32
    %c0_i32_0 = arith.constant 0 : i32
    %c0_i32_1 = arith.constant 0 : i32
    return %arg1, %c0_i32, %c0_i32_0 : i32, i32, i32
  }
  func.func @transform_6(%arg0: i32, %arg1: i32) -> (i32, i32, i32) {
    %c0_i32 = arith.constant 0 : i32
    %c0_i32_0 = arith.constant 0 : i32
    %c0_i32_1 = arith.constant 0 : i32
    return %arg1, %c0_i32, %c0_i32_0 : i32, i32, i32
  }
  func.func @transform_7(%arg0: i32, %arg1: i32) -> (i32, i32, i32) {
    %c0_i32 = arith.constant 0 : i32
    %c0_i32_0 = arith.constant 0 : i32
    %c0_i32_1 = arith.constant 0 : i32
    return %arg1, %c0_i32, %c0_i32_0 : i32, i32, i32
  }
  func.func @transform_8(%arg0: i32, %arg1: i32) -> (i32, i32, i32) {
    %c0_i32 = arith.constant 0 : i32
    %c0_i32_0 = arith.constant 0 : i32
    %c0_i32_1 = arith.constant 0 : i32
    return %arg1, %c0_i32, %c0_i32_0 : i32, i32, i32
  }
  func.func @transform_9(%arg0: i32, %arg1: i32) -> (i32, i32, i32) {
    %c0_i32 = arith.constant 0 : i32
    %c0_i32_0 = arith.constant 0 : i32
    %c0_i32_1 = arith.constant 0 : i32
    return %arg1, %c0_i32, %c0_i32_0 : i32, i32, i32
  }
  func.func @transform_10(%arg0: i32, %arg1: i32) -> (i32, i32, i32) {
    %c0_i32 = arith.constant 0 : i32
    %c0_i32_0 = arith.constant 0 : i32
    %c0_i32_1 = arith.constant 0 : i32
    return %arg1, %c0_i32, %c0_i32_0 : i32, i32, i32
  }
  func.func @transform_11(%arg0: i32, %arg1: i32) -> (i32, i32, i32) {
    %c0_i32 = arith.constant 0 : i32
    %c0_i32_0 = arith.constant 0 : i32
    %c0_i32_1 = arith.constant 0 : i32
    return %arg1, %c0_i32, %c0_i32_0 : i32, i32, i32
  }
  func.func @transform_12(%arg0: i32, %arg1: i32) -> (i32, i32, i32) {
    %c0_i32 = arith.constant 0 : i32
    %c0_i32_0 = arith.constant 0 : i32
    %c0_i32_1 = arith.constant 0 : i32
    return %arg1, %c0_i32, %c0_i32_0 : i32, i32, i32
  }
  func.func @transform_13(%arg0: i32, %arg1: i32) -> (i32, i32, i32) {
    %c0_i32 = arith.constant 0 : i32
    %c0_i32_0 = arith.constant 0 : i32
    %c0_i32_1 = arith.constant 0 : i32
    return %arg1, %c0_i32, %c0_i32_0 : i32, i32, i32
  }
  func.func @transform_14(%arg0: i32, %arg1: i32) -> (i32, i32, i32) {
    %c0_i32 = arith.constant 0 : i32
    %c0_i32_0 = arith.constant 0 : i32
    %c0_i32_1 = arith.constant 0 : i32
    return %arg1, %c0_i32, %c0_i32_0 : i32, i32, i32
  }
  func.func @transform_15(%arg0: i32, %arg1: i32) -> (i32, i32, i32) {
    %c0_i32 = arith.constant 0 : i32
    %c0_i32_0 = arith.constant 0 : i32
    %c0_i32_1 = arith.constant 0 : i32
    return %arg1, %c0_i32, %c0_i32_0 : i32, i32, i32
  }
  func.func @transform_16(%arg0: i32, %arg1: i32) -> (i32, i32) {
    %c0_i32 = arith.constant 0 : i32
    %c0_i32_0 = arith.constant 0 : i32
    %c0_i32_1 = arith.constant 0 : i32
    return %c0_i32, %c0_i32_0 : i32, i32
  }
  func.func @transform_17(%arg0: i32, %arg1: i32) -> (i32, i32) {
    %c0_i32 = arith.constant 0 : i32
    %c0_i32_0 = arith.constant 0 : i32
    %c0_i32_1 = arith.constant 0 : i32
    return %c0_i32, %c0_i32_0 : i32, i32
  }
  func.func @transform_18(%arg0: i32, %arg1: i32) -> (i32, i32) {
    %c0_i32 = arith.constant 0 : i32
    %c0_i32_0 = arith.constant 0 : i32
    %c0_i32_1 = arith.constant 0 : i32
    return %c0_i32, %c0_i32_0 : i32, i32
  }
  func.func @transform_19(%arg0: i32, %arg1: i32) -> (i32, i32) {
    %c0_i32 = arith.constant 0 : i32
    %c0_i32_0 = arith.constant 0 : i32
    %c0_i32_1 = arith.constant 0 : i32
    return %c0_i32, %c0_i32_0 : i32, i32
  }
  func.func @transform_20(%arg0: i32, %arg1: i32) -> (i32, i32) {
    %c0_i32 = arith.constant 0 : i32
    %c0_i32_0 = arith.constant 0 : i32
    %c0_i32_1 = arith.constant 0 : i32
    return %c0_i32, %c0_i32_0 : i32, i32
  }
  func.func @transform_21(%arg0: i32, %arg1: i32) -> (i32, i32) {
    %c0_i32 = arith.constant 0 : i32
    %c0_i32_0 = arith.constant 0 : i32
    %c0_i32_1 = arith.constant 0 : i32
    return %c0_i32, %c0_i32_0 : i32, i32
  }
  func.func @transform_22(%arg0: i32, %arg1: i32) -> (i32, i32) {
    %c0_i32 = arith.constant 0 : i32
    %c0_i32_0 = arith.constant 0 : i32
    return %arg0, %c0_i32 : i32, i32
  }
}

</mosaic_0001>

<bundles_post_ra>
// kernel: nn_d_forward.1
= control target key start
LH: loop header
LB: loop body
LE: loop exit
PB: predicated region body
PF: predicated region fallthrough
CT: control target
= control target key end

     0   :  { %s4326_s0 = inlined_call_operand.vmem [shape: f32[2,8,6], index: 0, kind: input, shape index: {}]   ;;  %s4327_s1 = inlined_call_operand.vmem [shape: f32[8,32], index: 1, kind: input, shape index: {}]   ;;  %s4328_s2 = inlined_call_operand.vmem [shape: f32[6,32], index: 2, kind: input, shape index: {}]   ;;  %s4329_s3 = inlined_call_operand.vmem [shape: f32[1,32], index: 3, kind: input, shape index: {}]   ;;  %s4330_s4 = inlined_call_operand.vmem [shape: f32[2,32,96], index: 4, kind: input, shape index: {}]   ;;  %s4331_s5 = inlined_call_operand.vmem [shape: f32[2,1,96], index: 5, kind: input, shape index: {}]   ;;  %s4332_s6 = inlined_call_operand.vmem [shape: f32[2,32,32], index: 6, kind: input, shape index: {}]   ;;  %s4333_s7 = inlined_call_operand.vmem [shape: f32[2,1,32], index: 7, kind: input, shape index: {}]   ;;  %s4334_s8 = inlined_call_operand.vmem [shape: f32[2,1,32], index: 8, kind: input, shape index: {}]   ;;  %s4335_s9 = inlined_call_operand.vmem [shape: f32[2,1,32], index: 9, kind: input, shape index: {}]   ;;  %s4336_s10 = inlined_call_operand.vmem [shape: f32[2,32,64], index: 10, kind: input, shape index: {}]   ;;  %s4337_s11 = inlined_call_operand.vmem [shape: f32[2,1,64], index: 11, kind: input, shape index: {}]   ;;  %s4338_s12 = inlined_call_operand.vmem [shape: f32[2,64,32], index: 12, kind: input, shape index: {}]   ;;  %s4339_s13 = inlined_call_operand.vmem [shape: f32[2,1,32], index: 13, kind: input, shape index: {}]   ;;  %s4340_s14 = inlined_call_operand.vmem [shape: f32[2,1,32], index: 14, kind: input, shape index: {}]   ;;  %s4341_s15 = inlined_call_operand.vmem [shape: f32[2,1,32], index: 15, kind: input, shape index: {}]   ;;  %s4342_s16 = inlined_call_operand.vmem [shape: f32[32,128], index: 16, kind: input, shape index: {}]   ;;  %s4343_s17 = inlined_call_operand.vmem [shape: f32[1,128], index: 17, kind: input, shape index: {}]   ;;  %s4344_s18 = inlined_call_operand.vmem [shape: f32[128,32], index: 18, kind: input, shape index: {}]   ;;  %s4345_s19 = inlined_call_operand.vmem [shape: f32[1,32], index: 19, kind: input, shape index: {}]   ;;  %s4346_s20 = inlined_call_operand.vmem [shape: f32[1,32], index: 20, kind: input, shape index: {}]   ;;  %s4347_s21 = inlined_call_operand.<no memory space> [shape: f32[1,1], index: 21, kind: input, shape index: {}]   ;;  %s4348_s22 = inlined_call_operand.hbm [shape: f32[2,8], index: 22, kind: output, shape index: {}]  }
   0x1   :  { %4353 = sst [smem:[#allocation10_spill]] %s4326_s0  ;;  %v27_v0 = vstv %s4347_s21 }
   0x2   :  { %4354 = sst [smem:[#allocation11_spill]] %s4327_s1  ;;  %28 = vst [vmem:[#allocation3] sm:$0x1] %v27_v0 }
   0x3   :  { %4355 = sst [smem:[#allocation12_spill]] %s4328_s2 }
   0x4   :  { %4356 = sst [smem:[#allocation13_spill]] %s4329_s3 }
   0x5   :  { %4357 = sst [smem:[#allocation14_spill]] %s4330_s4 }
   0x6   :  { %4358 = sst [smem:[#allocation15_spill]] %s4331_s5 }
   0x7   :  { %4359 = sst [smem:[#allocation16_spill]] %s4332_s6 }
   0x8   :  { %4360 = sst [smem:[#allocation17_spill]] %s4343_s17 }
   0x9   :  { %4361 = sst [smem:[#allocation18_spill]] %s4344_s18 }
   0xa   :  { %4362 = sst [smem:[#allocation19_spill]] %s4345_s19 }
   0xb   :  { %4363 = sst [smem:[#allocation20_spill]] %s4346_s20 }
   0xc   :  { %4364 = sst [smem:[#allocation21_spill]] %s4348_s22 }
   0xd   :  { %29 = vsyncpa [#allocation5], 0  ;;  %s3898_s29 = smov 0   ;;  %s3900_s30 = smov 0  }
   0xe   :  { %s3902_s4 = smov 0  }
   0xf LB: > { %4365 = sst [smem:[#allocation7_spill]] %s3756_s30  ;;  %s44_s0 = sadd.s32 1, %s3756_s30  ;;  %s3760_s4 = sphi %s3902_s4, %s35_s4   ;;  %s3756_s30 = sphi %s3900_s30, %s4390_s30   ;;  %s3752_s29 = sphi %s3898_s29, %s4389_s29  }
  0x10   : > { %4366 = sst [smem:[#allocation8_spill]] %s3760_s4  ;;  %p45_p0 = scmp.ge.s32.totalorder %s44_s0, 2 }
  0x11   : > { %p3271_p1 = scmp.ge.s32.totalorder %s3760_s4, 1  ;;  %p732_p2 = scmp.lt.s32.totalorder %s3760_s4, 3 }
  0x12   : > { %s4392_s0 = smov (%p45_p0, %s44_s0), 0 }
  0x13   : > { %4367 = sst [smem:[#allocation9_spill]] %s4392_s0  ;;  %p733_p3 = pnand %p3271_p1, %p732_p2 }
  0x14   : > { %p839_p4 = scmp.lt.s32.totalorder (!%p733_p3), %s3752_s29, 1  ;;  %s4369_s27 = sld [smem:[#allocation14_spill]] (!%p733_p3) }
  0x15   : > { %736 = sbr.rel (%p733_p3) target bundleno = 4758 (0x1296), region = 108  ;;  %s4370_s0 = sld [smem:[#allocation16_spill]] (!%p733_p3) }
  0x16   : > { %p3280_p5 = scmp.ne.s32.totalorder (!%p733_p3), %s3752_s29, 0 }
  0x1a   : > { %s3921_s23 = scalar_select %p839_p4, %s3752_s29, 1 }
  0x1b   : > { %s4371_s22 = sld [smem:[#allocation12_spill]] (!%p3280_p5) }
  0x1c   : > { %s3338_s1 = sshll.u32 %s3921_s23, 5  ;;  %s868_s28 = scalar_lea.vmem %s4337_s11, %s3921_s23 }
  0x1d   : > { %s3931_s3 = scalar_lea.vmem %s4369_s27, %s3338_s1  ;;  %s3936_s30 = scalar_lea.vmem %s4370_s0, %s3338_s1 }
  0x1e   : > { %s3953_s27 = scalar_lea.vmem %s4336_s10, %s3338_s1  ;;  %s3341_s25 = sshll.u32 %s3921_s23, 6 }
  0x1f   : > { %s3963_s20 = scalar_lea.vmem %s4338_s12, %s3341_s25  ;;  %s876_s5 = scalar_lea.vmem %s4339_s13, %s3921_s23 }
  0x20   : > { %s879_s26 = scalar_lea.vmem %s4340_s14, %s3921_s23  ;;  %s882_s18 = scalar_lea.vmem %s4341_s15, %s3921_s23 }
  0x21   : > { %886 = sbr.rel (%p3280_p5) target bundleno = 244 (0xf4), region = 112  ;;  %s4372_s17 = sld [smem:[#allocation10_spill]] (!%p3280_p5) }
  0x22   : > { %s4373_s2 = sld [smem:[#allocation13_spill]] (!%p3280_p5) }
  0x26   : > { %v889_v1 = vld [vmem:[%s4371_s22] sm:$0x3f]  ;;  %vm904_vm0 = vcmask 1045504   ;;  %vm897_vm1 = vcmask 48128   ;;  %s4374_s22 = sld [smem:[#allocation11_spill]]  ;;  %vm992_vm3 = vcmask 261120  }
  0x27   : > { %v887_v2 = vld [vmem:[%s4372_s17] sm:$0xff]  ;;  %v888_v3 = vld [vmem:[%s4372_s17 + $0x8] sm:$0xff]  ;;  %3429 = vmatprep.subr.msk.mxu0 %vm904_vm0, %v889_v1 }
  0x28   : > { %3431 = vmatprep.mubr.msk.f32.mxu0 %vm897_vm1, %v887_v2  ;;  %3430 = vmatpush3.msk.msra.mxu0 %vm904_vm0, %v889_v1  ;;  %v3281_v4 = vld [vmem:[%s4373_s2] ss:$0 sm:$0xff] }
  0x29   : > { %3432 = vmatmul.mubr.msk.f32.vlgmr.msra.gmra.mxu0 %vm897_vm1, %v888_v3 }
  0x2c   : > { %v989_v9 = vld [vmem:[%s4374_s22] sm:$0xff] }
  0xe9   : > { %v3433_v5 = vpop.f32.mrf.mxu0 }
  0xea   : > { %v980_v6 = vadd.f32 %v3433_v5, %v3281_v4 }
  0xeb   : > { %v974_v7 = vpop.f32.mrf.mxu0 }
  0xec   : > { %vm984_vm2 = vcmp.ge.f32.partialorder %v980_v6, 0.0  ;;  %v986_v8 = vmul.f32 0.01, %v980_v6  ;;  %v975_v10 = vadd.f32 %v3281_v4, %v974_v7 }
  0xee   : > { %v988_v11 = vsel %vm984_vm2, %v980_v6, %v986_v8  ;;  %vm983_vm4 = vcmp.ge.f32.partialorder %v975_v10, 0.0  ;;  %v985_v12 = vmul.f32 0.01, %v975_v10 }
  0xef   : > { %v991_v13 = vadd.f32 %v989_v9, %v988_v11 }
  0xf0   : > { %v987_v14 = vsel %vm983_vm4, %v975_v10, %v985_v12 }
  0xf1   : > { %994 = vst.msk [vmem:[#allocation2 + $0x8] sm:$0xff] %vm992_vm3, %v991_v13  ;;  %v990_v15 = vadd.f32 %v989_v9, %v987_v14 }
  0xf3   : > { %993 = vst.msk [vmem:[#allocation2] sm:$0xff] %vm992_vm3, %v990_v15 }
  0xf4 PF: > { %v1006_v16 = vld [vmem:[%s3931_s3 + $0x18] sm:$0xff]  ;;  %v1005_v17 = vld [vmem:[%s3931_s3 + $0x10] sm:$0xff]  ;;  %vm1014_vm5 = vcmask 261120   ;;  %v1004_v19 = vld [vmem:[%s3931_s3 + $0x8] sm:$0xff]  ;;  %v3762_v22 = vmov 0.0   ;;  %vm3763_vm6 = vmmov 0   ;;  %v995_v30 = vlaneseq }
  0xf5   : > { %3434 = vmatprep.subr.mxu1 %v1006_v16  ;;  %v1003_v20 = vld [vmem:[%s3931_s3] sm:$0xff]  ;;  %3455 = vmatprep.subr.mxu0 %v3762_v22  ;;  %s4375_s4 = sld [smem:[#allocation15_spill]]  ;;  %s3764_s6 = smov 96   ;;  %vm1099_vm7 = vcmask 64512   ;;  %vm2444_vm9 = vcmask 195584   ;;  %vm2441_vm10 = vcmask 130048  }
  0xf6   : > { %3435 = vmatpush3.msra.mxu1 %v1006_v16  ;;  %3457 = vmatprep.mubr.msk.f32.mxu0 %vm3763_vm6, %v3762_v22  ;;  %v4034_v31 = vshrl.u32 %v995_v30, 7  ;;  %v4036_v32 = vand.u32 127, %v995_v30  ;;  %s3765_s24 = smov 64   ;;  %s3766_s1 = smov 88   ;;  %vm2695_vm11 = vcmask 523264  }
  0xf7   : > { %3436 = vmatprep.subr.mxu1 %v1005_v17  ;;  %s3767_s2 = smov 120   ;;  %s3768_s21 = smov 56  }
  0xf8   : > { %3437 = vmatpush3.msra.mxu1 %v1005_v17  ;;  %v4001_v21 = vld [vmem:[#allocation2 + $0x8] sm:$0xff]  ;;  %vm999_vm8 = vcmp.gt.s32.totalorder %v4036_v32, %v4034_v31  ;;  %s3769_s0 = smov 80   ;;  %s3770_s22 = smov 112  }
  0xf9   : > { %3438 = vmatprep.subr.mxu1 %v1004_v19  ;;  %v4041_v33 = vsel %vm999_vm8, -1e+30, %v3762_v22  ;;  %s3771_s3 = smov 48   ;;  %s3772_s25 = smov 72  }
  0xfa   : > { %v3995_v18 = vld [vmem:[#allocation2] sm:$0xff]  ;;  %3439 = vmatpush3.msra.mxu1 %v1004_v19  ;;  %p3325_p6 = scmp.ne.s32.totalorder %s3752_s29, 1 }
  0xfb   : > { %3442 = vmatprep.mubr.msk.f32.mxu1 %vm1014_vm5, %v3995_v18  ;;  %3440 = vmatprep.subr.mxu1 %v1003_v20  ;;  %s4376_s19 = scalar_lea.vmem %s4375_s4, %s3921_s23  ;;  %s3773_s4 = smov 104  }
  0xfc   : > { %3441 = vmatpush3.msra.mxu1 %v1003_v20  ;;  %v3285_v24 = vld [vmem:[%s4376_s19] ss:$0 sm:$0xff]  ;;  %s3774_s19 = smov 40  }
  0xfd   : > { %3443 = vmatmul.mubr.msk.f32.vlgmr.msra.gmra.mxu1 %vm1014_vm5, %v4001_v21  ;;  %3445 = vmatprep.subr.mxu1 %v3762_v22 }
  0xfe   : > { %3447 = vmatprep.mubr.msk.f32.mxu1 %vm3763_vm6, %v3762_v22 }
 0x1bd   : > { %v3444_v23 = vpop.f32.mrf.mxu1 }
 0x1be   : > { %v4019_v27 = vadd.f32 %v3444_v23, %v3285_v24 }
 0x1bf   : > { %v1087_v25 = vpop.f32.mrf.mxu1 }
 0x1c0   : > { %v4016_v26 = vadd.f32 %v3285_v24, %v1087_v25 }
 0x1c2   : > { %1097 = vrot.lane.b32.xlu0 %v4016_v26, %s3764_s6 }
 0x1c6   : > { %1175 = vrot.lane.b32.xlu0 %v4019_v27, %s3764_s6  ;;  %s3775_s6 = smov 8  }
 0x234   : > { %v1098_v28 = vpop.permute.xlu0 %1097 }
 0x235   : > { %3446 = vmatpush3.xpose.msk.msra.mxu1 %vm1099_vm7, %v1098_v28 }
 0x236   : > { %3450 = vmatprep.subr.mxu1 %v3762_v22 }
 0x238   : > { %v1176_v29 = vpop.permute.xlu0 %1175  ;;  %3448 = vmatmul.mubr.msk.f32.vlgmr.msra.gmra.mxu1 %vm1099_vm7, %v4016_v26 }
 0x239   : > { %3451 = vmatpush3.xpose.msk.msra.mxu1 %vm1099_vm7, %v1176_v29  ;;  %3452 = vmatprep.mubr.msk.f32.mxu1 %vm3763_vm6, %v3762_v22 }
 0x23a   : > { %3460 = vmatprep.subr.mxu1 %v3762_v22 }
 0x23c   : > { %3453 = vmatmul.mubr.msk.f32.vlgmr.msra.gmra.mxu1 %vm1099_vm7, %v4019_v27 }
 0x23d   : > { %3462 = vmatprep.mubr.msk.f32.mxu1 %vm3763_vm6, %v3762_v22 }
 0x2f8   : > { %v1170_v34 = vpop.f32.mrf.mxu1 }
 0x2f9   : > { %v1171_v35 = vadd.f32 %v1170_v34, %v4041_v33 }
 0x2fa   : > { %v3449_v36 = vpop.f32.mrf.mxu1 }
 0x2fb   : > { %v1251_v37 = vsel %vm1099_vm7, %v1171_v35, -inf }
 0x2fc   : > { %v1247_v38 = vpop.f32.mrf.mxu1  ;;  %1252 = vmax.xlane.f32.xlu1 %v1251_v37 }
 0x2fd   : > { %v1248_v39 = vadd.f32 %v1247_v38, %v4041_v33 }
 0x2fe   : > { %v3454_v40 = vpop.f32.mrf.mxu1 }
 0x2ff   : > { %v1254_v41 = vsel %vm1099_vm7, %v1248_v39, -inf }
 0x300   : > { %1255 = vmax.xlane.f32.xlu1 %v1254_v41 }
 0x311   : > { %1273 = vrot.lane.b32.xlu1 %v4016_v26, %s3765_s24 }
 0x315   : > { %1349 = vrot.lane.b32.xlu1 %v4019_v27, %s3765_s24  ;;  %s3776_s24 = smov 16  }
 0x319   : > { %1427 = vrot.lane.b32.xlu1 %v4016_v26, %s3766_s1 }
 0x31d   : > { %1505 = vrot.lane.b32.xlu1 %v4019_v27, %s3766_s1  ;;  %s3777_s1 = smov 24  }
 0x385   : > { %v1253_v42 = vpop.xlane.xlu1 %1252 }
 0x386   : > { %v1257_v43 = vsub.f32 %v1171_v35, %v1253_v42 }
 0x388   : > { %v1259_v44 = vmul.f32 1.442695, %v1257_v43 }
 0x389   : > { %v1256_v45 = vpop.xlane.xlu1 %1255 }
 0x38a   : > { %3660 = vpow2.f32 %v1259_v44  ;;  %v1258_v46 = vsub.f32 %v1248_v39, %v1256_v45 }
 0x38c   : > { %v1261_v47 = vmul.f32 1.442695, %v1258_v46 }
 0x38d   : > { %v1274_v48 = vpop.permute.xlu1 %1273 }
 0x38e   : > { %3662 = vpow2.f32 %v1261_v47  ;;  %3456 = vmatpush3.msra.mxu0 %v1274_v48 }
 0x38f   : > { %3465 = vmatprep.subr.mxu0 %v3762_v22 }
 0x391   : > { %v1350_v49 = vpop.permute.xlu1 %1349 }
 0x392   : > { %3461 = vmatpush3.msra.mxu1 %v1350_v49 }
 0x393   : > { %3470 = vmatprep.subr.mxu1 %v3762_v22 }
 0x395   : > { %v1428_v54 = vpop.permute.xlu1 %1427 }
 0x397   : > { %v3661_v50 = vpop.eup %3660 }
 0x398   : > { %v1263_v51 = vsel %vm1099_vm7, %v3661_v50, 0.0 }
 0x399   : > { %1264 = vadd.xlane.f32.xlu0 %v1263_v51  ;;  %v1506_v55 = vpop.permute.xlu1 %1505 }
 0x39b   : > { %v3663_v52 = vpop.eup %3662 }
 0x39c   : > { %v1266_v53 = vsel %vm1099_vm7, %v3663_v52, 0.0 }
 0x39d   : > { %1267 = vadd.xlane.f32.xlu1 %v1266_v53 }
 0x3ae   : > { %1503 = vrot.lane.b32.xlu1 %v4019_v27, %s3767_s2 }
 0x3af   : > { %1425 = vrot.lane.b32.xlu0 %v4016_v26, %s3767_s2 }
 0x422   : > { %v1265_v56 = vpop.xlane.xlu0 %1264 }
 0x423   : > { %3664 = vrcp.f32 %v1265_v56 }
 0x426   : > { %v1268_v57 = vpop.xlane.xlu1 %1267  ;;  %v1426_v62 = vpop.permute.xlu0 %1425 }
 0x427   : > { %3666 = vrcp.f32 %v1268_v57 }
 0x42a   : > { %v1504_v63 = vpop.permute.xlu1 %1503 }
 0x430   : > { %v3665_v58 = vpop.eup %3664 }
 0x431   : > { %v1271_v59 = vmul.f32 %v3665_v58, %v3661_v50 }
 0x433   : > { %3458 = vmatmul.mubr.msk.f32.vlgmr.msra.gmra.mxu0 %vm1099_vm7, %v1271_v59 }
 0x434   : > { %v3667_v60 = vpop.eup %3666  ;;  %3466 = vmatpush3.xpose.msk.msra.mxu0 %vm1099_vm7, %v1428_v54  ;;  %3467 = vmatprep.mubr.msk.f32.mxu0 %vm3763_vm6, %v3762_v22 }
 0x435   : > { %v1272_v61 = vmul.f32 %v3667_v60, %v3663_v52  ;;  %3475 = vmatprep.subr.mxu0 %v3762_v22 }
 0x437   : > { %3463 = vmatmul.mubr.msk.f32.vlgmr.msra.gmra.mxu1 %vm1099_vm7, %v1272_v61  ;;  %3468 = vmatmul.mubr.msk.f32.vlgmr.msra.gmra.mxu0 %vm1099_vm7, %v1426_v62 }
 0x438   : > { %3471 = vmatpush3.xpose.msk.msra.mxu1 %vm1099_vm7, %v1506_v55  ;;  %3472 = vmatprep.mubr.msk.f32.mxu1 %vm3763_vm6, %v3762_v22 }
 0x439   : > { %3480 = vmatprep.subr.mxu1 %v3762_v22  ;;  %3477 = vmatprep.mubr.msk.f32.mxu0 %vm3763_vm6, %v3762_v22 }
 0x43b   : > { %3473 = vmatmul.mubr.msk.f32.vlgmr.msra.gmra.mxu1 %vm1099_vm7, %v1504_v63 }
 0x43c   : > { %3482 = vmatprep.mubr.msk.f32.mxu1 %vm3763_vm6, %v3762_v22 }
 0x4f3   : > { %v4073_v0 = vpop.f32.mrf.mxu0 }
 0x4f5   : > { %v3459_v1 = vpop.f32.mrf.mxu0 }
 0x4f7   : > { %v4075_v2 = vpop.f32.mrf.mxu1  ;;  %v1499_v3 = vpop.f32.mrf.mxu0 }
 0x4f8   : > { %v1500_v4 = vadd.f32 %v1499_v3, %v4041_v33 }
 0x4f9   : > { %v3464_v5 = vpop.f32.mrf.mxu1  ;;  %v3469_v6 = vpop.f32.mrf.mxu0 }
 0x4fa   : > { %v1581_v7 = vsel %vm1099_vm7, %v1500_v4, -inf }
 0x4fb   : > { %1582 = vmax.xlane.f32.xlu1 %v1581_v7  ;;  %v1577_v8 = vpop.f32.mrf.mxu1 }
 0x4fc   : > { %v1578_v9 = vadd.f32 %v1577_v8, %v4041_v33 }
 0x4fd   : > { %v3474_v10 = vpop.f32.mrf.mxu1 }
 0x4fe   : > { %v1584_v11 = vsel %vm1099_vm7, %v1578_v9, -inf }
 0x4ff   : > { %1585 = vmax.xlane.f32.xlu0 %v1584_v11 }
 0x50c   : > { %1603 = vrot.lane.b32.xlu1 %v4016_v26, %s3768_s21 }
 0x510   : > { %1757 = vrot.lane.b32.xlu1 %v4016_v26, %s3769_s0 }
 0x514   : > { %1835 = vrot.lane.b32.xlu1 %v4019_v27, %s3769_s0  ;;  %s4380_s0 = sld [smem:[#allocation18_spill]] (!%p3325_p6) }
 0x515   : > { %1679 = vrot.lane.b32.xlu0 %v4019_v27, %s3768_s21  ;;  %s4377_s21 = scalar_lea.vmem %s4333_s7, %s3921_s23 }
 0x519   : > { %1755 = vrot.lane.b32.xlu0 %v4016_v26, %s3770_s22 }
 0x584   : > { %v1583_v12 = vpop.xlane.xlu1 %1582 }
 0x585   : > { %v1587_v13 = vsub.f32 %v1500_v4, %v1583_v12 }
 0x587   : > { %v1589_v14 = vmul.f32 1.442695, %v1587_v13 }
 0x588   : > { %v1586_v15 = vpop.xlane.xlu0 %1585  ;;  %v1604_v16 = vpop.permute.xlu1 %1603 }
 0x589   : > { %3668 = vpow2.f32 %v1589_v14  ;;  %v1588_v17 = vsub.f32 %v1578_v9, %v1586_v15  ;;  %3476 = vmatpush3.msra.mxu0 %v1604_v16 }
 0x58a   : > { %3485 = vmatprep.subr.mxu0 %v3762_v22 }
 0x58b   : > { %v1591_v19 = vmul.f32 1.442695, %v1588_v17 }
 0x58c   : > { %v1680_v20 = vpop.permute.xlu0 %1679  ;;  %v1758_v29 = vpop.permute.xlu1 %1757 }
 0x58d   : > { %3670 = vpow2.f32 %v1591_v19  ;;  %3481 = vmatpush3.msra.mxu1 %v1680_v20 }
 0x58e   : > { %3490 = vmatprep.subr.mxu1 %v3762_v22 }
 0x590   : > { %v1836_v30 = vpop.permute.xlu1 %1835  ;;  %v1756_v40 = vpop.permute.xlu0 %1755 }
 0x596   : > { %v3669_v23 = vpop.eup %3668 }
 0x597   : > { %v1593_v24 = vsel %vm1099_vm7, %v3669_v23, 0.0 }
 0x598   : > { %1594 = vadd.xlane.f32.xlu1 %v1593_v24 }
 0x59a   : > { %v3671_v25 = vpop.eup %3670 }
 0x59b   : > { %v1596_v28 = vsel %vm1099_vm7, %v3671_v25, 0.0 }
 0x59c   : > { %1597 = vadd.xlane.f32.xlu1 %v1596_v28 }
 0x5ad   : > { %1833 = vrot.lane.b32.xlu1 %v4019_v27, %s3770_s22  ;;  %s4378_s22 = scalar_lea.vmem %s4334_s8, %s3921_s23 }
 0x621   : > { %v1595_v34 = vpop.xlane.xlu1 %1594 }
 0x622   : > { %3672 = vrcp.f32 %v1595_v34 }
 0x625   : > { %v1598_v35 = vpop.xlane.xlu1 %1597 }
 0x626   : > { %3674 = vrcp.f32 %v1598_v35 }
 0x629   : > { %v1834_v41 = vpop.permute.xlu1 %1833 }
 0x62f   : > { %v3673_v36 = vpop.eup %3672 }
 0x630   : > { %v1601_v37 = vmul.f32 %v3673_v36, %v3669_v23 }
 0x632   : > { %3478 = vmatmul.mubr.msk.f32.vlgmr.msra.gmra.mxu0 %vm1099_vm7, %v1601_v37 }
 0x633   : > { %v3675_v38 = vpop.eup %3674  ;;  %3486 = vmatpush3.xpose.msk.msra.mxu0 %vm1099_vm7, %v1758_v29  ;;  %3487 = vmatprep.mubr.msk.f32.mxu0 %vm3763_vm6, %v3762_v22 }
 0x634   : > { %v1602_v39 = vmul.f32 %v3675_v38, %v3671_v25  ;;  %3495 = vmatprep.subr.mxu0 %v3762_v22 }
 0x636   : > { %3483 = vmatmul.mubr.msk.f32.vlgmr.msra.gmra.mxu1 %vm1099_vm7, %v1602_v39  ;;  %3488 = vmatmul.mubr.msk.f32.vlgmr.msra.gmra.mxu0 %vm1099_vm7, %v1756_v40 }
 0x637   : > { %3491 = vmatpush3.xpose.msk.msra.mxu1 %vm1099_vm7, %v1836_v30  ;;  %3492 = vmatprep.mubr.msk.f32.mxu1 %vm3763_vm6, %v3762_v22 }
 0x638   : > { %3500 = vmatprep.subr.mxu1 %v3762_v22  ;;  %3497 = vmatprep.mubr.msk.f32.mxu0 %vm3763_vm6, %v3762_v22 }
 0x63a   : > { %3493 = vmatmul.mubr.msk.f32.vlgmr.msra.gmra.mxu1 %vm1099_vm7, %v1834_v41 }
 0x63b   : > { %3502 = vmatprep.mubr.msk.f32.mxu1 %vm3763_vm6, %v3762_v22 }
 0x6f2   : > { %v4107_v42 = vpop.f32.mrf.mxu0 }
 0x6f4   : > { %v3479_v43 = vpop.f32.mrf.mxu0 }
 0x6f6   : > { %v4109_v44 = vpop.f32.mrf.mxu1  ;;  %v1829_v45 = vpop.f32.mrf.mxu0 }
 0x6f7   : > { %v1830_v46 = vadd.f32 %v1829_v45, %v4041_v33 }
 0x6f8   : > { %v3484_v47 = vpop.f32.mrf.mxu1  ;;  %v3489_v48 = vpop.f32.mrf.mxu0 }
 0x6f9   : > { %v1911_v49 = vsel %vm1099_vm7, %v1830_v46, -inf }
 0x6fa   : > { %1912 = vmax.xlane.f32.xlu0 %v1911_v49  ;;  %v1907_v50 = vpop.f32.mrf.mxu1  ;;  %v2450_v49 = vld [vmem:[%s3936_s30 + $0x18] sm:$0xff] }
 0x6fb   : > { %v1908_v51 = vadd.f32 %v1907_v50, %v4041_v33  ;;  %v2449_v50 = vld [vmem:[%s3936_s30 + $0x10] sm:$0xff] }
 0x6fc   : > { %v3494_v52 = vpop.f32.mrf.mxu1 }
 0x6fd   : > { %v1914_v53 = vsel %vm1099_vm7, %v1908_v51, -inf }
 0x6fe   : > { %1915 = vmax.xlane.f32.xlu1 %v1914_v53 }
 0x70f   : > { %1933 = vrot.lane.b32.xlu1 %v4016_v26, %s3771_s3 }
 0x710   : > { %2009 = vrot.lane.b32.xlu0 %v4019_v27, %s3771_s3  ;;  %s4382_s3 = sld [smem:[#allocation19_spill]] (!%p3325_p6) }
 0x713   : > { %2087 = vrot.lane.b32.xlu1 %v4016_v26, %s3772_s25 }
 0x717   : > { %2165 = vrot.lane.b32.xlu1 %v4019_v27, %s3772_s25 }
 0x71b   : > { %2163 = vrot.lane.b32.xlu1 %v4019_v27, %s3773_s4 }
 0x783   : > { %v1913_v54 = vpop.xlane.xlu0 %1912 }
 0x784   : > { %v1917_v55 = vsub.f32 %v1830_v46, %v1913_v54 }
 0x786   : > { %v1919_v56 = vmul.f32 1.442695, %v1917_v55 }
 0x787   : > { %v2010_v57 = vpop.permute.xlu0 %2009  ;;  %v1916_v58 = vpop.xlane.xlu1 %1915 }
 0x788   : > { %3676 = vpow2.f32 %v1919_v56  ;;  %v1918_v59 = vsub.f32 %v1908_v51, %v1916_v58  ;;  %3501 = vmatpush3.msra.mxu1 %v2010_v57  ;;  %v2447_v51 = vld [vmem:[%s3936_s30] sm:$0xff] }
 0x789   : > { %3510 = vmatprep.subr.mxu1 %v3762_v22 }
 0x78a   : > { %v1921_v60 = vmul.f32 1.442695, %v1918_v59 }
 0x78b   : > { %v1934_v61 = vpop.permute.xlu1 %1933 }
 0x78c   : > { %3678 = vpow2.f32 %v1921_v60  ;;  %3496 = vmatpush3.msra.mxu0 %v1934_v61 }
 0x78d   : > { %3505 = vmatprep.subr.mxu0 %v3762_v22 }
 0x78f   : > { %v2088_v6 = vpop.permute.xlu1 %2087 }
 0x793   : > { %v2166_v10 = vpop.permute.xlu1 %2165 }
 0x795   : > { %v3677_v62 = vpop.eup %3676 }
 0x796   : > { %v1923_v63 = vsel %vm1099_vm7, %v3677_v62, 0.0 }
 0x797   : > { %1924 = vadd.xlane.f32.xlu0 %v1923_v63  ;;  %v2164_v13 = vpop.permute.xlu1 %2163 }
 0x799   : > { %v3679_v1 = vpop.eup %3678 }
 0x79a   : > { %v1926_v3 = vsel %vm1099_vm7, %v3679_v1, 0.0 }
 0x79b   : > { %1927 = vadd.xlane.f32.xlu0 %v1926_v3 }
 0x7b1   : > { %2085 = vrot.lane.b32.xlu0 %v4016_v26, %s3773_s4  ;;  %s4379_s4 = scalar_lea.vmem %s4335_s9, %s3921_s23 }
 0x820   : > { %v1925_v4 = vpop.xlane.xlu0 %1924 }
 0x821   : > { %3680 = vrcp.f32 %v1925_v4 }
 0x824   : > { %v1928_v5 = vpop.xlane.xlu0 %1927 }
 0x825   : > { %3682 = vrcp.f32 %v1928_v5 }
 0x828   : > { %v2086_v12 = vpop.permute.xlu0 %2085 }
 0x82e   : > { %v3681_v7 = vpop.eup %3680 }
 0x82f   : > { %v1931_v8 = vmul.f32 %v3681_v7, %v3677_v62 }
 0x831   : > { %3498 = vmatmul.mubr.msk.f32.vlgmr.msra.gmra.mxu0 %vm1099_vm7, %v1931_v8 }
 0x832   : > { %v3683_v9 = vpop.eup %3682  ;;  %3506 = vmatpush3.xpose.msk.msra.mxu0 %vm1099_vm7, %v2088_v6  ;;  %3507 = vmatprep.mubr.msk.f32.mxu0 %vm3763_vm6, %v3762_v22 }
 0x833   : > { %v1932_v11 = vmul.f32 %v3683_v9, %v3679_v1  ;;  %3515 = vmatprep.subr.mxu0 %v3762_v22 }
 0x835   : > { %3503 = vmatmul.mubr.msk.f32.vlgmr.msra.gmra.mxu1 %vm1099_vm7, %v1932_v11  ;;  %3508 = vmatmul.mubr.msk.f32.vlgmr.msra.gmra.mxu0 %vm1099_vm7, %v2086_v12 }
 0x836   : > { %3511 = vmatpush3.xpose.msk.msra.mxu1 %vm1099_vm7, %v2166_v10  ;;  %3512 = vmatprep.mubr.msk.f32.mxu1 %vm3763_vm6, %v3762_v22 }
 0x837   : > { %3520 = vmatprep.subr.mxu1 %v3762_v22  ;;  %3517 = vmatprep.mubr.msk.f32.mxu0 %vm3763_vm6, %v3762_v22 }
 0x839   : > { %3513 = vmatmul.mubr.msk.f32.vlgmr.msra.gmra.mxu1 %vm1099_vm7, %v2164_v13 }
 0x83a   : > { %3522 = vmatprep.mubr.msk.f32.mxu1 %vm3763_vm6, %v3762_v22 }
 0x8f1   : > { %v2005_v14 = vpop.f32.mrf.mxu0 }
 0x8f3   : > { %v3499_v15 = vpop.f32.mrf.mxu0 }
 0x8f5   : > { %v2081_v16 = vpop.f32.mrf.mxu1  ;;  %v2159_v17 = vpop.f32.mrf.mxu0 }
 0x8f6   : > { %v2160_v19 = vadd.f32 %v2159_v17, %v4041_v33 }
 0x8f7   : > { %v3504_v20 = vpop.f32.mrf.mxu1  ;;  %v3509_v23 = vpop.f32.mrf.mxu0 }
 0x8f8   : > { %v2241_v24 = vsel %vm1099_vm7, %v2160_v19, -inf }
 0x8f9   : > { %2242 = vmax.xlane.f32.xlu0 %v2241_v24  ;;  %v2237_v25 = vpop.f32.mrf.mxu1  ;;  %v2589_v24 = vld [vmem:[%s3953_s27 + $0x18] sm:$0xff] }
 0x8fa   : > { %v2238_v28 = vadd.f32 %v2237_v25, %v4041_v33  ;;  %v2588_v25 = vld [vmem:[%s3953_s27 + $0x10] sm:$0xff] }
 0x8fb   : > { %v3514_v29 = vpop.f32.mrf.mxu1 }
 0x8fc   : > { %v2244_v30 = vsel %vm1099_vm7, %v2238_v28, -inf  ;;  %v2586_v29 = vld [vmem:[%s3953_s27] sm:$0xff] }
 0x8fd   : > { %2245 = vmax.xlane.f32.xlu1 %v2244_v30  ;;  %v2687_v30 = vld [vmem:[%s3963_s20 + $0x38] sm:$0xff] }
 0x90e   : > { %2263 = vrot.lane.b32.xlu1 %v4016_v26, %s3774_s19 }
 0x912   : > { %2417 = vrot.lane.b32.xlu1 %v4107_v42, %s3775_s6 }
 0x916   : > { %2419 = vrot.lane.b32.xlu1 %v4109_v44, %s3775_s6 }
 0x91a   : > { %2427 = vrot.lane.b32.xlu1 %v2081_v16, %s3776_s24 }
 0x982   : > { %v2243_v22 = vpop.xlane.xlu0 %2242 }
 0x983   : > { %v2247_v34 = vsub.f32 %v2160_v19, %v2243_v22  ;;  %v2686_v22 = vld [vmem:[%s3963_s20 + $0x30] sm:$0xff] }
 0x985   : > { %v2249_v35 = vmul.f32 1.442695, %v2247_v34  ;;  %v2685_v34 = vld [vmem:[%s3963_s20 + $0x28] sm:$0xff] }
 0x986   : > { %v2246_v36 = vpop.xlane.xlu1 %2245 }
 0x987   : > { %3684 = vpow2.f32 %v2249_v35  ;;  %v2248_v33 = vsub.f32 %v2238_v28, %v2246_v36  ;;  %v2587_v28 = vld [vmem:[%s3953_s27 + $0x8] sm:$0xff]  ;;  %v2684_v35 = vld [vmem:[%s3963_s20 + $0x20] sm:$0xff] }
 0x989   : > { %v2251_v37 = vmul.f32 1.442695, %v2248_v33 }
 0x98a   : > { %v2264_v38 = vpop.permute.xlu1 %2263 }
 0x98b   : > { %3686 = vpow2.f32 %v2251_v37  ;;  %3516 = vmatpush3.msra.mxu0 %v2264_v38 }
 0x98c   : > { %3525 = vmatprep.subr.mxu0 %v2450_v49 }
 0x98e   : > { %v2418_v56 = vpop.permute.xlu1 %2417 }
 0x98f   : > { %v2439_v59 = vsel %vm1099_vm7, %v4073_v0, %v2418_v56  ;;  %v3312_v0 = vld [vmem:[%s4377_s21] ss:$0 sm:$0xff] }
 0x992   : > { %v2420_v57 = vpop.permute.xlu1 %2419 }
 0x993   : > { %v2440_v1 = vsel %vm1099_vm7, %v4075_v2, %v2420_v57 }
 0x994   : > { %v3685_v39 = vpop.eup %3684 }
 0x995   : > { %v2253_v26 = vsel %vm1099_vm7, %v3685_v39, 0.0 }
 0x996   : > { %2254 = vadd.xlane.f32.xlu0 %v2253_v26  ;;  %v2428_v60 = vpop.permute.xlu1 %2427 }
 0x997   : > { %v2443_v3 = vsel %vm2441_vm10, %v2440_v1, %v2428_v60  ;;  %v3320_v60 = vld [vmem:[%s876_s5] ss:$0 sm:$0xff] }
 0x998   : > { %v3687_v40 = vpop.eup %3686 }
 0x999   : > { %v2256_v41 = vsel %vm1099_vm7, %v3687_v40, 0.0 }
 0x99a   : > { %2257 = vadd.xlane.f32.xlu0 %v2256_v41  ;;  %v3315_v41 = vld [vmem:[%s4378_s22] ss:$0 sm:$0xff] }
 0x9b0   : > { %2339 = vrot.lane.b32.xlu0 %v4019_v27, %s3774_s19  ;;  %v2448_v27 = vld [vmem:[%s3936_s30 + $0x8] sm:$0xff] }
 0x9b4   : > { %2425 = vrot.lane.b32.xlu0 %v2005_v14, %s3776_s24 }
 0xa1f   : > { %v2255_v42 = vpop.xlane.xlu0 %2254 }
 0xa20   : > { %3688 = vrcp.f32 %v2255_v42 }
 0xa23   : > { %v2258_v43 = vpop.xlane.xlu0 %2257 }
 0xa24   : > { %3690 = vrcp.f32 %v2258_v43  ;;  %v3316_v43 = vld [vmem:[%s4379_s4] ss:$0 sm:$0xff]  ;;  %s4383_s4 = sld [smem:[#allocation20_spill]] (!%p3325_p6) }
 0xa27   : > { %v2340_v44 = vpop.permute.xlu0 %2339 }
 0xa28   : > { %3521 = vmatpush3.msra.mxu1 %v2340_v44 }
 0xa29   : > { %3536 = vmatprep.subr.mxu1 %v2589_v24 }
 0xa2b   : > { %v2426_v58 = vpop.permute.xlu0 %2425 }
 0xa2c   : > { %v2442_v61 = vsel %vm2441_vm10, %v2439_v59, %v2426_v58 }
 0xa2d   : > { %v3689_v45 = vpop.eup %3688 }
 0xa2e   : > { %v2261_v46 = vmul.f32 %v3689_v45, %v3685_v39 }
 0xa30   : > { %3518 = vmatmul.mubr.msk.f32.vlgmr.msra.gmra.mxu0 %vm1099_vm7, %v2261_v46 }
 0xa31   : > { %v3691_v47 = vpop.eup %3690  ;;  %3526 = vmatpush3.msra.mxu0 %v2450_v49 }
 0xa32   : > { %v2262_v48 = vmul.f32 %v3691_v47, %v3687_v40  ;;  %3527 = vmatprep.subr.mxu0 %v2449_v50 }
 0xa33   : > { %3528 = vmatpush3.msra.mxu0 %v2449_v50  ;;  %v2683_v50 = vld [vmem:[%s3963_s20 + $0x18] sm:$0xff] }
 0xa34   : > { %3523 = vmatmul.mubr.msk.f32.vlgmr.msra.gmra.mxu1 %vm1099_vm7, %v2262_v48  ;;  %3529 = vmatprep.subr.mxu0 %v2448_v27 }
 0xa35   : > { %3530 = vmatpush3.msra.mxu0 %v2448_v27  ;;  %3537 = vmatpush3.msra.mxu1 %v2589_v24  ;;  %v2682_v27 = vld [vmem:[%s3963_s20 + $0x10] sm:$0xff] }
 0xa36   : > { %3531 = vmatprep.subr.mxu0 %v2447_v51  ;;  %3538 = vmatprep.subr.mxu1 %v2588_v25 }
 0xa37   : > { %3532 = vmatpush3.msra.mxu0 %v2447_v51  ;;  %3539 = vmatpush3.msra.mxu1 %v2588_v25  ;;  %v2681_v51 = vld [vmem:[%s3963_s20 + $0x8] sm:$0xff] }
 0xa38   : > { %3540 = vmatprep.subr.mxu1 %v2587_v28  ;;  %3547 = vmatprep.subr.mxu0 %v2687_v30 }
 0xa39   : > { %3541 = vmatpush3.msra.mxu1 %v2587_v28  ;;  %v3324_v28 = vld [vmem:[%s882_s18] ss:$0 sm:$0xff]  ;;  %s4381_s18 = sld [smem:[#allocation17_spill]] (!%p3325_p6) }
 0xa3a   : > { %3542 = vmatprep.subr.mxu1 %v2586_v29 }
 0xa3b   : > { %3543 = vmatpush3.msra.mxu1 %v2586_v29 }
 0xaf0   : > { %v2335_v52 = vpop.f32.mrf.mxu0 }
 0xaf1   : > { %2433 = vrot.lane.b32.xlu0 %v2335_v52, %s3777_s1  ;;  %v2680_v52 = vld [vmem:[%s3963_s20] sm:$0xff] }
 0xaf2   : > { %v3519_v53 = vpop.f32.mrf.mxu0 }
 0xaf3   : > { %v3317_v53 = vld [vmem:[%s868_s28] ss:$0 sm:$0xff] }
 0xaf4   : > { %v2411_v54 = vpop.f32.mrf.mxu1 }
 0xaf5   : > { %2435 = vrot.lane.b32.xlu1 %v2411_v54, %s3777_s1 }
 0xaf6   : > { %v3524_v55 = vpop.f32.mrf.mxu1 }
 0xb63   : > { %v2434_v62 = vpop.permute.xlu0 %2433 }
 0xb64   : > { %v2445_v63 = vsel %vm2444_vm9, %v2442_v61, %v2434_v62 }
 0xb65   : > { %3533 = vmatprep.mubr.msk.f32.mxu0 %vm1014_vm5, %v2445_v63 }
 0xb67   : > { %v2436_v4 = vpop.permute.xlu1 %2435 }
 0xb68   : > { %v2446_v5 = vsel %vm2444_vm9, %v2443_v3, %v2436_v4 }
 0xb69   : > { %3534 = vmatmul.mubr.msk.f32.vlgmr.msra.gmra.mxu0 %vm1014_vm5, %v2446_v5 }
 0xb6a   : > { %3548 = vmatpush3.msra.mxu0 %v2687_v30 }
 0xb6b   : > { %3549 = vmatprep.subr.mxu0 %v2686_v22 }
 0xb6c   : > { %3550 = vmatpush3.msra.mxu0 %v2686_v22 }
 0xb6d   : > { %3551 = vmatprep.subr.mxu0 %v2685_v34 }
 0xb6e   : > { %3552 = vmatpush3.msra.mxu0 %v2685_v34 }
 0xb6f   : > { %3553 = vmatprep.subr.mxu0 %v2684_v35 }
 0xb70   : > { %3554 = vmatpush3.msra.mxu0 %v2684_v35 }
 0xb71   : > { %3555 = vmatprep.subr.mxu0 %v2683_v50 }
 0xb72   : > { %3556 = vmatpush3.msra.mxu0 %v2683_v50 }
 0xb73   : > { %3557 = vmatprep.subr.mxu0 %v2682_v27 }
 0xb74   : > { %3558 = vmatpush3.msra.mxu0 %v2682_v27 }
 0xb75   : > { %3559 = vmatprep.subr.mxu0 %v2681_v51 }
 0xb76   : > { %3560 = vmatpush3.msra.mxu0 %v2681_v51 }
 0xb77   : > { %3561 = vmatprep.subr.mxu0 %v2680_v52 }
 0xb78   : > { %3562 = vmatpush3.msra.mxu0 %v2680_v52 }
 0xc29   : > { %v3535_v6 = vpop.f32.mrf.mxu0 }
 0xc2a   : > { %v2536_v7 = vadd.f32 %v3535_v6, %v3312_v0 }
 0xc2b   : > { %v2530_v8 = vpop.f32.mrf.mxu0 }
 0xc2c   : > { %v2531_v9 = vadd.f32 %v3312_v0, %v2530_v8  ;;  %v2540_v10 = vadd.f32 %v2536_v7, %v4001_v21 }
 0xc2e   : > { %v2546_v11 = vsel %vm1014_vm5, %v2540_v10, 0.0  ;;  %v2539_v2 = vadd.f32 %v2531_v9, %v3995_v18 }
 0xc2f   : > { %2547 = vadd.xlane.f32.xlu1 %v2546_v11 }
 0xc30   : > { %v2543_v12 = vsel %vm1014_vm5, %v2539_v2, 0.0 }
 0xc31   : > { %2544 = vadd.xlane.f32.xlu0 %v2543_v12 }
 0xcb8   : > { %v2548_v13 = vpop.xlane.xlu1 %2547 }
 0xcb9   : > { %v2551_v14 = vmul.f32 0.03125, %v2548_v13 }
 0xcba   : > { %v2545_v15 = vpop.xlane.xlu0 %2544 }
 0xcbb   : > { %v2550_v16 = vmul.f32 0.03125, %v2545_v15  ;;  %v2553_v17 = vsub.f32 %v2540_v10, %v2551_v14 }
 0xcbd   : > { %v2552_v19 = vsub.f32 %v2539_v2, %v2550_v16  ;;  %v2555_v23 = vmul.f32 %v2553_v17, %v2553_v17 }
 0xcbf   : > { %v2554_v20 = vmul.f32 %v2552_v19, %v2552_v19  ;;  %v2559_v18 = vsel %vm1014_vm5, %v2555_v23, 0.0 }
 0xcc1   : > { %v2556_v21 = vsel %vm1014_vm5, %v2554_v20, 0.0 }
 0xcc2   : > { %2557 = vadd.xlane.f32.xlu0 %v2556_v21 }
 0xcc6   : > { %2560 = vadd.xlane.f32.xlu0 %v2559_v18  ;;  %v3323_v18 = vld [vmem:[%s879_s26] ss:$0 sm:$0xff] }
 0xd4b   : > { %v2558_v36 = vpop.xlane.xlu0 %2557 }
 0xd4c   : > { %v2562_v33 = vmul.f32 0.03125, %v2558_v36 }
 0xd4e   : > { %v2564_v37 = vadd.f32 1e-05, %v2562_v33 }
 0xd4f   : > { %v2561_v38 = vpop.xlane.xlu0 %2560 }
 0xd50   : > { %3692 = vrsqrt.f32 %v2564_v37  ;;  %v2563_v39 = vmul.f32 0.03125, %v2561_v38 }
 0xd52   : > { %v2565_v26 = vadd.f32 1e-05, %v2563_v39 }
 0xd54   : > { %3694 = vrsqrt.f32 %v2565_v26 }
 0xd5d   : > { %v3693_v40 = vpop.eup %3692 }
 0xd5e   : > { %v2568_v42 = vmul.f32 %v3693_v40, %v2552_v19 }
 0xd60   : > { %v2576_v44 = vmul.f32 %v3315_v41, %v2568_v42 }
 0xd61   : > { %v3695_v45 = vpop.eup %3694 }
 0xd62   : > { %v2569_v46 = vmul.f32 %v3695_v45, %v2553_v17  ;;  %v2584_v47 = vadd.f32 %v3316_v43, %v2576_v44 }
 0xd64   : > { %v2577_v48 = vmul.f32 %v3315_v41, %v2569_v46  ;;  %3544 = vmatprep.mubr.msk.f32.mxu1 %vm1014_vm5, %v2584_v47 }
 0xd66   : > { %v2585_v49 = vadd.f32 %v3316_v43, %v2577_v48 }
 0xd68   : > { %3545 = vmatmul.mubr.msk.f32.vlgmr.msra.gmra.mxu1 %vm1014_vm5, %v2585_v49 }
 0xe28   : > { %v3546_v54 = vpop.f32.mrf.mxu1 }
 0xe29   : > { %v2675_v55 = vadd.f32 %v3546_v54, %v3317_v53 }
 0xe2a   : > { %v2669_v56 = vpop.f32.mrf.mxu1 }
 0xe2b   : > { %v2670_v57 = vadd.f32 %v3317_v53, %v2669_v56  ;;  %v2679_v59 = vmax.f32 %v2675_v55, 0.0 }
 0xe2d   : > { %v2678_v58 = vmax.f32 %v2670_v57, 0.0 }
 0xe2f   : > { %3563 = vmatprep.mubr.msk.f32.mxu0 %vm2695_vm11, %v2678_v58 }
 0xe30   : > { %3564 = vmatmul.mubr.msk.f32.vlgmr.msra.gmra.mxu0 %vm2695_vm11, %v2679_v59 }
 0xef0   : > { %v3565_v61 = vpop.f32.mrf.mxu0 }
 0xef1   : > { %v2774_v62 = vadd.f32 %v3565_v61, %v3320_v60 }
 0xef2   : > { %v2768_v63 = vpop.f32.mrf.mxu0 }
 0xef3   : > { %v2769_v1 = vadd.f32 %v3320_v60, %v2768_v63  ;;  %v2778_v3 = vadd.f32 %v2774_v62, %v2585_v49 }
 0xef5   : > { %v2784_v4 = vsel %vm1014_vm5, %v2778_v3, 0.0  ;;  %v2777_v5 = vadd.f32 %v2769_v1, %v2584_v47 }
 0xef6   : > { %2785 = vadd.xlane.f32.xlu0 %v2784_v4 }
 0xef7   : > { %v2781_v0 = vsel %vm1014_vm5, %v2777_v5, 0.0 }
 0xef8   : > { %2782 = vadd.xlane.f32.xlu1 %v2781_v0 }
 0xf7f   : > { %v2786_v6 = vpop.xlane.xlu0 %2785 }
 0xf80   : > { %v2788_v7 = vmul.f32 0.03125, %v2786_v6 }
 0xf81   : > { %v2783_v8 = vpop.xlane.xlu1 %2782 }
 0xf82   : > { %v2790_v9 = vsub.f32 %v2778_v3, %v2788_v7  ;;  %v2787_v10 = vmul.f32 0.03125, %v2783_v8 }
 0xf84   : > { %v2789_v11 = vsub.f32 %v2777_v5, %v2787_v10  ;;  %v2792_v2 = vmul.f32 %v2790_v9, %v2790_v9 }
 0xf86   : > { %v2796_v12 = vsel %vm1014_vm5, %v2792_v2, 0.0  ;;  %v2791_v13 = vmul.f32 %v2789_v11, %v2789_v11 }
 0xf87   : > { %2797 = vadd.xlane.f32.xlu0 %v2796_v12 }
 0xf88   : > { %v2793_v14 = vsel %vm1014_vm5, %v2791_v13, 0.0 }
 0xf89   : > { %2794 = vadd.xlane.f32.xlu1 %v2793_v14 }
0x1010   : > { %v2798_v15 = vpop.xlane.xlu0 %2797 }
0x1011   : > { %v2800_v16 = vmul.f32 0.03125, %v2798_v15 }
0x1012   : > { %v2795_v17 = vpop.xlane.xlu1 %2794 }
0x1013   : > { %v2802_v19 = vadd.f32 1e-05, %v2800_v16  ;;  %v2799_v20 = vmul.f32 0.03125, %v2795_v17 }
0x1015   : > { %3696 = vrsqrt.f32 %v2802_v19  ;;  %v2801_v21 = vadd.f32 1e-05, %v2799_v20 }
0x1017   : > { %3698 = vrsqrt.f32 %v2801_v21 }
0x1022   : > { %v3697_v23 = vpop.eup %3696 }
0x1023   : > { %v2806_v24 = vmul.f32 %v3697_v23, %v2790_v9 }
0x1024   : > { %v3699_v25 = vpop.eup %3698 }
0x1025   : > { %v2814_v29 = vmul.f32 %v3323_v18, %v2806_v24  ;;  %v2805_v30 = vmul.f32 %v3699_v25, %v2789_v11 }
0x1027   : > { %v2822_v22 = vadd.f32 %v3324_v28, %v2814_v29  ;;  %v2813_v34 = vmul.f32 %v3323_v18, %v2805_v30  ;;  %2828 = sbr.rel (%p3325_p6) target bundleno = 4733 (0x127d), region = 116 }
0x1029   : > { %2824 = vst.msk [vmem:[#allocation2 + $0x8] sm:$0xff] %vm1014_vm5, %v2822_v22  ;;  %v2821_v35 = vadd.f32 %v3324_v28, %v2813_v34 }
0x102b   : > { %2823 = vst.msk [vmem:[#allocation2] sm:$0xff] %vm1014_vm5, %v2821_v35 }
0x102c   : > { %v2832_v36 = vld [vmem:[%s4342_s16 + $0x18] sm:$0xff]  ;;  %v2831_v33 = vld [vmem:[%s4342_s16 + $0x10] sm:$0xff]  ;;  %3574 = vmatprep.mubr.msk.f32.mxu0 %vm1014_vm5, %v2821_v35  ;;  %v2830_v39 = vld [vmem:[%s4342_s16 + $0x8] sm:$0xff]  ;;  %v3778_v63 = vmov 0   ;;  %v3074_v28 = vsub.s32 %v4036_v32, %v4034_v31  ;;  %vm3080_vm0 = vcmask 1041409   ;;  %vm3083_vm1 = vcmask 58368  }
0x102d   : > { %3566 = vmatprep.subr.mxu0 %v2832_v36  ;;  %v2942_v37 = vld [vmem:[%s4380_s0 + $0x78] sm:$0xff]  ;;  %v2941_v38 = vld [vmem:[%s4380_s0 + $0x70] sm:$0xff]  ;;  %v2940_v26 = vld [vmem:[%s4380_s0 + $0x68] sm:$0xff]  ;;  %3700 = vset.pattern.permute.xlu1 %v3778_v63 }
0x102e   : > { %3567 = vmatpush3.msra.mxu0 %v2832_v36  ;;  %3577 = vmatprep.subr.mxu1 %v2942_v37  ;;  %v2829_v40 = vld [vmem:[%s4342_s16] sm:$0xff]  ;;  %v2938_v42 = vld [vmem:[%s4380_s0 + $0x58] sm:$0xff]  ;;  %v2937_v43 = vld [vmem:[%s4380_s0 + $0x50] sm:$0xff] }
0x102f   : > { %3568 = vmatprep.subr.mxu0 %v2831_v33  ;;  %3578 = vmatpush3.msra.mxu1 %v2942_v37  ;;  %v2939_v41 = vld [vmem:[%s4380_s0 + $0x60] sm:$0xff]  ;;  %v2936_v44 = vld [vmem:[%s4380_s0 + $0x48] sm:$0xff]  ;;  %v2934_v46 = vld [vmem:[%s4380_s0 + $0x38] sm:$0xff] }
0x1030   : > { %3569 = vmatpush3.msra.mxu0 %v2831_v33  ;;  %3579 = vmatprep.subr.mxu1 %v2941_v38  ;;  %v2935_v45 = vld [vmem:[%s4380_s0 + $0x40] sm:$0xff]  ;;  %v2933_v47 = vld [vmem:[%s4380_s0 + $0x30] sm:$0xff]  ;;  %v2932_v48 = vld [vmem:[%s4380_s0 + $0x28] sm:$0xff] }
0x1031   : > { %3570 = vmatprep.subr.mxu0 %v2830_v39  ;;  %3580 = vmatpush3.msra.mxu1 %v2941_v38  ;;  %v2931_v49 = vld [vmem:[%s4380_s0 + $0x20] sm:$0xff]  ;;  %v2930_v50 = vld [vmem:[%s4380_s0 + $0x18] sm:$0xff]  ;;  %v2929_v27 = vld [vmem:[%s4380_s0 + $0x10] sm:$0xff] }
0x1032   : > { %3571 = vmatpush3.msra.mxu0 %v2830_v39  ;;  %3581 = vmatprep.subr.mxu1 %v2940_v26  ;;  %v2928_v51 = vld [vmem:[%s4380_s0 + $0x8] sm:$0xff]  ;;  %v2927_v52 = vld [vmem:[%s4380_s0] sm:$0xff]  ;;  %v3331_v62 = vld [vmem:[#allocation3] ss:$0 sm:$0xff] }
0x1033   : > { %3572 = vmatprep.subr.mxu0 %v2829_v40  ;;  %3582 = vmatpush3.msra.mxu1 %v2940_v26  ;;  %v3326_v53 = vld [vmem:[%s4381_s18] ss:$0 sm:$0xff] }
0x1034   : > { %3573 = vmatpush3.msra.mxu0 %v2829_v40  ;;  %3583 = vmatprep.subr.mxu1 %v2939_v41  ;;  %v3329_v1 = vld [vmem:[%s4382_s3] ss:$0 sm:$0xff] }
0x1035   : > { %3575 = vmatmul.mubr.msk.f32.vlgmr.msra.gmra.mxu0 %vm1014_vm5, %v2822_v22  ;;  %3584 = vmatpush3.msra.mxu1 %v2939_v41  ;;  %v3330_v9 = vld [vmem:[%s4383_s4] ss:$0 sm:$0xff] }
0x1036   : > { %3585 = vmatprep.subr.mxu1 %v2938_v42  ;;  %3701 = vset.pattern.permute.xlu0 %v3778_v63 }
0x1037   : > { %3586 = vmatpush3.msra.mxu1 %v2938_v42  ;;  %3053 = vperm.xlu1 %3700, %v3331_v62  }
0x1038   : > { %3587 = vmatprep.subr.mxu1 %v2937_v43 }
0x1039   : > { %3588 = vmatpush3.msra.mxu1 %v2937_v43 }
0x103a   : > { %3589 = vmatprep.subr.mxu1 %v2936_v44 }
0x103b   : > { %3590 = vmatpush3.msra.mxu1 %v2936_v44 }
0x103c   : > { %3591 = vmatprep.subr.mxu1 %v2935_v45 }
0x103d   : > { %3592 = vmatpush3.msra.mxu1 %v2935_v45 }
0x103e   : > { %3593 = vmatprep.subr.mxu1 %v2934_v46 }
0x103f   : > { %3594 = vmatpush3.msra.mxu1 %v2934_v46 }
0x1040   : > { %3595 = vmatprep.subr.mxu1 %v2933_v47 }
0x1041   : > { %3596 = vmatpush3.msra.mxu1 %v2933_v47 }
0x1042   : > { %3597 = vmatprep.subr.mxu1 %v2932_v48 }
0x1043   : > { %3598 = vmatpush3.msra.mxu1 %v2932_v48 }
0x1044   : > { %3599 = vmatprep.subr.mxu1 %v2931_v49 }
0x1045   : > { %3600 = vmatpush3.msra.mxu1 %v2931_v49 }
0x1046   : > { %3601 = vmatprep.subr.mxu1 %v2930_v50 }
0x1047   : > { %3602 = vmatpush3.msra.mxu1 %v2930_v50 }
0x1048   : > { %3603 = vmatprep.subr.mxu1 %v2929_v27 }
0x1049   : > { %3604 = vmatpush3.msra.mxu1 %v2929_v27 }
0x104a   : > { %3605 = vmatprep.subr.mxu1 %v2928_v51 }
0x104b   : > { %3606 = vmatpush3.msra.mxu1 %v2928_v51 }
0x104c   : > { %3607 = vmatprep.subr.mxu1 %v2927_v52 }
0x104d   : > { %3608 = vmatpush3.msra.mxu1 %v2927_v52 }
0x10b2   : > { %v3054_v14 = vpop.permute.xlu1 %3053 }
0x10f5   : > { %v3576_v54 = vpop.f32.mrf.mxu0 }
0x10f6   : > { %v2918_v55 = vadd.f32 %v3576_v54, %v3326_v53 }
0x10f7   : > { %v2912_v56 = vpop.f32.mrf.mxu0 }
0x10f8   : > { %v2913_v57 = vadd.f32 %v3326_v53, %v2912_v56  ;;  %v2924_v58 = vmul.f32 0.01, %v2918_v55  ;;  %vm2922_vm13 = vcmp.ge.f32.partialorder %v2918_v55, 0.0 }
0x10fa   : > { %vm2921_vm12 = vcmp.ge.f32.partialorder %v2913_v57, 0.0  ;;  %v2923_v59 = vmul.f32 0.01, %v2913_v57  ;;  %v2926_v61 = vsel %vm2922_vm13, %v2918_v55, %v2924_v58 }
0x10fc   : > { %v2925_v60 = vsel %vm2921_vm12, %v2913_v57, %v2923_v59 }
0x10fd   : > { %3609 = vmatprep.mubr.f32.mxu1 %v2925_v60 }
0x10fe   : > { %3610 = vmatmul.mubr.f32.vlgmr.msra.gmra.mxu1 %v2926_v61 }
0x11be   : > { %v3611_v3 = vpop.f32.mrf.mxu1 }
0x11bf   : > { %v3022_v4 = vadd.f32 %v3611_v3, %v3329_v1 }
0x11c0   : > { %v3016_v5 = vpop.f32.mrf.mxu1 }
0x11c1   : > { %v3028_v0 = vmul.f32 0.01, %v3022_v4  ;;  %v3017_v6 = vadd.f32 %v3329_v1, %v3016_v5  ;;  %vm3026_vm14 = vcmp.ge.f32.partialorder %v3022_v4, 0.0 }
0x11c3   : > { %v3027_v7 = vmul.f32 0.01, %v3017_v6  ;;  %vm3025_vm15 = vcmp.ge.f32.partialorder %v3017_v6, 0.0  ;;  %v3030_v10 = vsel %vm3026_vm14, %v3022_v4, %v3028_v0 }
0x11c4   : > { %v3039_v12 = vmul.f32 %v3330_v9, %v3030_v10 }
0x11c5   : > { %v3029_v8 = vsel %vm3025_vm15, %v3017_v6, %v3027_v7 }
0x11c6   : > { %v3038_v11 = vmul.f32 %v3330_v9, %v3029_v8  ;;  %v3043_v13 = vsel %vm1014_vm5, %v3039_v12, 0.0 }
0x11c8   : > { %v3040_v2 = vsel %vm1014_vm5, %v3038_v11, 0.0 }
0x11c9   : > { %3041 = vadd.xlane.f32.xlu0 %v3040_v2 }
0x11cd   : > { %3044 = vadd.xlane.f32.xlu0 %v3043_v13 }
0x1252   : > { %v3042_v15 = vpop.xlane.xlu0 %3041 }
0x1253   : > { %v3056_v16 = vadd.f32 %v3054_v14, %v3042_v15 }
0x1255   : > { %v3332_v17 = vmul.f32 -1.442695, %v3056_v16 }
0x1256   : > { %v3045_v19 = vpop.xlane.xlu0 %3044 }
0x1257   : > { %3702 = vpow2.f32 %v3332_v17  ;;  %v3057_v20 = vadd.f32 %v3054_v14, %v3045_v19 }
0x1259   : > { %v3333_v21 = vmul.f32 -1.442695, %v3057_v20 }
0x125b   : > { %3704 = vpow2.f32 %v3333_v21 }
0x1264   : > { %v3703_v23 = vpop.eup %3702 }
0x1265   : > { %v3064_v18 = vadd.f32 1.0, %v3703_v23 }
0x1267   : > { %3706 = vrcp.f32 %v3064_v18 }
0x1268   : > { %v3705_v24 = vpop.eup %3704 }
0x1269   : > { %v3065_v25 = vadd.f32 1.0, %v3705_v24 }
0x126b   : > { %3708 = vrcp.f32 %v3065_v25 }
0x1274   : > { %v3707_v29 = vpop.eup %3706 }
0x1275   : > { %v3075_v22 = vrot.slane %v3707_v29, %v3074_v28 }
0x1278   : > { %v3709_v30 = vpop.eup %3708 }
0x1279   : > { %v3079_v34 = vrot.slane %v3709_v30, %v3074_v28 }
0x127b   : > { %v3081_v35 = vsel %vm3080_vm0, %v3079_v34, %v3075_v22 }
0x127c   : > { %3084 = vst.msk [vmem:[#allocation4] sm:$0x3] %vm3083_vm1, %v3081_v35 }
0x127d PF: > { %s4384_s19 = sld [smem:[#allocation8_spill]]  ;;  %s3779_s1 = smov [#allocation4]  }
0x127e   : > { %s3094_s20 = sshll.u32 %s3779_s1, 4  ;;  %s3095_s20 = int_to_ptr.vmem [resolvable:$true] %s3094_s20 }
0x127f   : > { %s3710_s28 = scalar_lea.vmem %s3095_s20, 32  ;;  %p3717_p11 = scmp.lt.s32.totalorder %s3095_s20, %s3095_s20 }
0x1280   : > { %p3711_p8 = scmp.ne.s32.totalorder %s3095_s20, %s3710_s28  ;;  %p3718_p12 = scmp.lt.s32.totalorder %s3710_s28, %s3710_s28 }
0x1282   : > { %p3719_p13 = por %p3718_p12, %p3717_p11 }
0x1283   : > { %s4385_s6 = sadd.s32 4294967295, %s4384_s19  }
0x1284   : > { %p4302_p7 = scmp.eq.s32.totalorder %s4385_s6, 1 }
0x1286   : > { %p3712_p9 = pnand %p3711_p8, %p4302_p7 }
0x1288   : > { %p3713_p10 = pneg %p3712_p9 }
0x128a   : > { %p3720_p0 = pnand %p3719_p13, %p3713_p10 }
0x128c   : > { %3723 = shalt.err (!%p3720_p0)
}
0x128d   : > { %s4387_s26 = sld [smem:[#allocation21_spill]] }
0x1293   : > { %3613 = dma.vmem_to_hbm [thread:$0]  (%p4302_p7), %s3095_s20, 32, %s4387_s26, [#allocation5]  }
0x1294   : > { %3747 = dma.done.wait (%p4302_p7), [#allocation5], 32  }
0x1295   : > { %3749 = vsyncadd (%p4302_p7), [#allocation5], 4294967264 }
0x1296 PF: > { %s4388_s2 = sld [smem:[#allocation8_spill]] }
0x1297   : > { %s4389_s29 = sld [smem:[#allocation7_spill]] }
0x1298   : > { %s4390_s30 = sld [smem:[#allocation9_spill]] }
0x129c   : > { %s35_s4 = sadd.s32 1, %s4388_s2  }
0x129d   : > { %p32_p1 = scmp.ge.s32.totalorder %s35_s4, 4  }
0x129f   :  { %34 = sbr.rel (!%p32_p1) target bundleno = 15 (0xf), region = 180 }
0x12a4   :  { %3107 = vsyncpa [#allocation5], 1 }
0x12a5   :  { %3109 = vsyncpa [#allocation5 + $0x1], 1 }

</bundles_post_ra>
